<compile_context>
chip_gen: v7x
topology: tpu7x:2x2x1
jax: 0.10.0
libtpu: 0.0.40
codegen_flags: <defaults>
</compile_context>

<pallas_src>
import functools

import numpy as np
import jax
import jax.numpy as jnp
from jax.experimental import pallas as pl
from jax.experimental.pallas import tpu as pltpu

# ----------------------------- module config --------------------------------
EMBED_DIMS = 32
NUM_HEADS = 4
HEAD_DIM = EMBED_DIMS // NUM_HEADS          # 8
TOP_K = 8                                   # constructor arg (module default 40)
SCALING = HEAD_DIM ** (-0.5)
PACK = 128 // EMBED_DIMS                    # 4 batches lane-packed -> 128-wide working set
EP = PACK * EMBED_DIMS                      # 128
N_SEG = PACK * NUM_HEADS                    # 16 (batch, head) segments of HEAD_DIM lanes


# ----------------------------- kernel helpers --------------------------------
def _segment_softmax(x, head_blk, perms):
    """Numerically-stable softmax over each aligned HEAD_DIM-lane segment.

    Segment max: 3 max steps using block-circulant permutation matmuls (MXU),
    segment sum: one block-diagonal ones matmul (MXU).  One exp pass (EUP).
    """
    m = x
    for p in perms:                          # group-circular shifts by 4, 2, 1
        m = jnp.maximum(m, jnp.dot(m, p, preferred_element_type=jnp.float32))
    e = jnp.exp(x - m)
    denom = jnp.dot(e, head_blk, preferred_element_type=jnp.float32)
    return e / denom                         # denom >= 1 (segment max subtracted)


def _fused_kernel(qsum_ref, q_ref, k_ref, v_ref, id_ref,
                  w_ref, b_ref, aux_ref, out_ref,
                  sel_ref, inner_ref, *, top_k):
    """Grid = (batch_group, q_tile).  Prologue at q_tile==0 computes the key-side
    work (projections, reliability score, top-k selection, sim_km, inner) and
    stores sel/inner in VMEM scratch; every q tile then does the query side."""
    Lk = k_ref.shape[0]

    head_blk = aux_ref[:, 0 * EP:1 * EP]                 # block-diag ones (sum / mask)
    perms = (aux_ref[:, 1 * EP:2 * EP],                  # segment-circular shift by 4
             aux_ref[:, 2 * EP:3 * EP],                  # by 2
             aux_ref[:, 3 * EP:4 * EP])                  # by 1

    # ---------------- key-side prologue (once per batch group) ---------------
    @pl.when(pl.program_id(1) == 0)
    def _prologue():
        k = jnp.dot(k_ref[...], w_ref[:, 1 * EP:2 * EP],
                    preferred_element_type=jnp.float32) + b_ref[:, 1 * EP:2 * EP]
        v = jnp.dot(v_ref[...], w_ref[:, 2 * EP:3 * EP],
                    preferred_element_type=jnp.float32) + b_ref[:, 2 * EP:3 * EP]

        # reliability score, head-replicated across each segment's 8 lanes:
        #   score[n, seg] = SCALING * (sum_q q_seg) . k_seg[n]
        score0 = jnp.dot(k * qsum_ref[...], head_blk,
                         preferred_element_type=jnp.float32)            # (Lk, EP)

        row_idx = jax.lax.broadcasted_iota(jnp.int32, (Lk, EP), 0).astype(jnp.float32)
        lane_in_seg = jnp.bitwise_and(
            jax.lax.broadcasted_iota(jnp.int32, (1, EP), 1), HEAD_DIM - 1)
        big = jnp.float32(Lk)
        neg = jnp.float32(-1e30)

        def select_one(t, carry):
            sc, m_sel = carry
            col_max = jnp.max(sc, axis=0, keepdims=True)                # XLU reduce 1
            cand = jnp.where(sc == col_max, row_idx, big)               # tie -> lowest idx
            sel = jnp.min(cand, axis=0, keepdims=True)                  # XLU reduce 2
            hit = row_idx == sel                                        # one row / column
            put = jnp.logical_and(hit, lane_in_seg == t)                # step t's lane slot
            m_sel = m_sel + jnp.where(put, 1.0, 0.0)                    # one-hot selection mtx
            sc = jnp.where(hit, neg, sc)
            return sc, m_sel

        _, m_sel = jax.lax.fori_loop(
            0, top_k, select_one,
            (score0, jnp.zeros((Lk, EP), jnp.float32)), unroll=True)

        # selected-key gather on the MXU; head_blk zeroes the off-diagonal blocks
        # so sel_bd is the block-diagonal assembly of sel_k_seg^T (Dh x top_k).
        sel_bd = head_blk * jnp.dot(k.T, m_sel, preferred_element_type=jnp.float32)
        sel_ref[...] = sel_bd

        sim_km = _segment_softmax(
            jnp.dot(k, sel_bd, preferred_element_type=jnp.float32) * SCALING,
            head_blk, perms)                                            # (Lk, EP)
        # inner_seg = sim_km_seg^T @ v_seg, assembled block-diagonally (MXU).
        inner_ref[...] = head_blk * jnp.dot(
            sim_km.T, v, preferred_element_type=jnp.float32)            # (EP, EP)

    # ---------------- query side (every Lq tile) ------------------------------
    q = jnp.dot(q_ref[...], w_ref[:, 0 * EP:1 * EP],
                preferred_element_type=jnp.float32) + b_ref[:, 0 * EP:1 * EP]
    sim_qn = _segment_softmax(
        jnp.dot(q, sel_ref[...], preferred_element_type=jnp.float32) * SCALING,
        head_blk, perms)                                                # (tq, EP)
    ctx = jnp.dot(sim_qn, inner_ref[...], preferred_element_type=jnp.float32)
    out = jnp.dot(ctx, w_ref[:, 3 * EP:4 * EP],
                  preferred_element_type=jnp.float32) + b_ref[:, 3 * EP:4 * EP]
    out_ref[...] = id_ref[...] + out        # dropouts (p=0.0) are identity


# ----------------------------- wrapper ---------------------------------------
def _pack_batches(x, b_pad):
    """(L, B, E) -> (G, L, PACK*E): PACK batches packed along the lane axis."""
    L, B, E = x.shape
    x = jnp.pad(x, ((0, 0), (0, b_pad - B), (0, 0)))
    x = x.reshape(L, b_pad // PACK, PACK, E)
    x = jnp.transpose(x, (1, 0, 2, 3))
    return x.reshape(b_pad // PACK, L, PACK * E)


def multihead_reliable_attention(query, params, key=None, value=None,
                                 identity=None, query_pos=None, key_pos=None):
    """Inputs in (seq_len, batch, embed_dims) layout (batch_first=False)."""
    if key is None:
        key = query
    if value is None:
        value = key
    if identity is None:
        identity = query
    if key_pos is None and query_pos is not None and query_pos.shape == key.shape:
        key_pos = query_pos
    if query_pos is not None:
        query = query + query_pos
    if key_pos is not None:
        key = key + key_pos

    Lq, B, E = query.shape
    Lk = key.shape[0]
    assert E == EMBED_DIMS
    top_k = min(TOP_K, Lk)
    assert top_k == HEAD_DIM, "fused kernel assumes top_k == head_dim"

    G = pl.cdiv(B, PACK)
    b_pad = G * PACK

    q_p = _pack_batches(query, b_pad)
    k_p = _pack_batches(key, b_pad)
    v_p = _pack_batches(value, b_pad)
    id_p = _pack_batches(identity, b_pad)

    # Lq-global part of the reliability score, hoisted out of the kernel so Lq
    # can be tiled:  SCALING * sum_q(q_proj) = SCALING * ((sum_q query) @ Wq^T + Lq*bq)
    qsum = jnp.sum(query, axis=0)                                   # (B, E)
    qsum = SCALING * (qsum @ params["wq"].T + Lq * params["bq"])
    qsum = jnp.pad(qsum, ((0, b_pad - B), (0, 0))).reshape(G, 1, EP)

    # block-diagonal packed weights (torch Linear: y = x @ W^T + b), fused DMA
    eye_p = jnp.eye(PACK, dtype=jnp.float32)
    w_all = jnp.concatenate(
        [jnp.kron(eye_p, params[n].T.astype(jnp.float32))
         for n in ("wq", "wk", "wv", "wo")], axis=1)                # (EP, 4EP)
    b_all = jnp.concatenate(
        [jnp.tile(params[n].astype(jnp.float32), PACK)
         for n in ("bq", "bk", "bv", "bo")]).reshape(1, 4 * EP)

    # constant matrices: block-diag ones (segment sum / mask) + 3 block-circulant
    # permutations (segment max tree), concatenated into one DMA.
    head_blk = np.kron(np.eye(N_SEG, dtype=np.float32),
                       np.ones((HEAD_DIM, HEAD_DIM), np.float32))
    perms = [np.kron(np.eye(N_SEG, dtype=np.float32),
                     np.roll(np.eye(HEAD_DIM, dtype=np.float32), s, axis=0))
             for s in (4, 2, 1)]
    aux = jnp.asarray(np.concatenate([head_blk] + perms, axis=1))   # (EP, 4EP)

    # Lq tiling (VMEM footprint / pipelining at production sequence lengths)
    q_tile = Lq
    for cand in (512, 256, 128):
        if Lq > cand and Lq % cand == 0:
            q_tile = cand
            break
    n_qt = Lq // q_tile
    # TODO(synk): pad Lq to a tile multiple for arbitrary production lengths.

    kv_spec = pl.BlockSpec((None, Lk, EP), lambda g, t: (g, 0, 0))
    qt_spec = pl.BlockSpec((None, q_tile, EP), lambda g, t: (g, t, 0))
    w_spec = pl.BlockSpec((EP, 4 * EP), lambda g, t: (0, 0))
    b_spec = pl.BlockSpec((1, 4 * EP), lambda g, t: (0, 0))
    qs_spec = pl.BlockSpec((None, 1, EP), lambda g, t: (g, 0, 0))

    out_p = pl.pallas_call(
        functools.partial(_fused_kernel, top_k=top_k),
        grid=(G, n_qt),
        in_specs=[qs_spec, qt_spec, kv_spec, kv_spec, qt_spec,
                  w_spec, b_spec, w_spec],
        out_specs=qt_spec,
        out_shape=jax.ShapeDtypeStruct((G, Lq, EP), jnp.float32),
        scratch_shapes=[pltpu.VMEM((EP, EP), jnp.float32),   # sel_bd
                        pltpu.VMEM((EP, EP), jnp.float32)],  # inner_bd
        compiler_params=pltpu.CompilerParams(
            dimension_semantics=("parallel", "arbitrary"),
            vmem_limit_bytes=64 * 1024 * 1024),
    )(qsum, q_p, k_p, v_p, id_p, w_all, b_all, aux)

    out = out_p.reshape(G, Lq, PACK, E)
    out = jnp.transpose(out, (1, 0, 2, 3)).reshape(Lq, b_pad, E)
    return out[:, :B, :]                                   # back to (L, B, E)


# ----------------------------- pure-JAX reference -----------------------------
def reference_forward(query, params):
    key = value = identity = query
    q_in = jnp.transpose(query, (1, 0, 2))
    k_in = jnp.transpose(key, (1, 0, 2))
    v_in = jnp.transpose(value, (1, 0, 2))
    B, Lq, E = q_in.shape
    Lk = k_in.shape[1]
    H, Dh = NUM_HEADS, HEAD_DIM

    q = q_in @ params["wq"].T + params["bq"]
    k = k_in @ params["wk"].T + params["bk"]
    v = v_in @ params["wv"].T + params["bv"]
    q = q.reshape(B, Lq, H, Dh).transpose(0, 2, 1, 3)
    k = k.reshape(B, Lk, H, Dh).transpose(0, 2, 1, 3)
    v = v.reshape(B, Lk, H, Dh).transpose(0, 2, 1, 3)

    sim_nm = jnp.einsum("bhqd,bhkd->bhqk", q, k) * SCALING
    score = sim_nm.sum(axis=2)
    tk = min(TOP_K, Lk)
    _, top_idx = jax.lax.top_k(score, tk)
    sel_k = jnp.take_along_axis(k, top_idx[..., None], axis=2)      # (B,H,tk,Dh)

    sim_qn = jax.nn.softmax(jnp.einsum("bhqd,bhtd->bhqt", q, sel_k) * SCALING, -1)
    sim_km = jax.nn.softmax(jnp.einsum("bhkd,bhtd->bhkt", k, sel_k) * SCALING, -1)
    sim_qk = jnp.einsum("bhqt,bhkt->bhqk", sim_qn, sim_km)
    out = jnp.einsum("bhqk,bhkd->bhqd", sim_qk, v)
    out = out.transpose(0, 2, 1, 3).reshape(B, Lq, E)
    out = out @ params["wo"].T + params["bo"]
    return identity + jnp.transpose(out, (1, 0, 2))


# ----------------------------- main -------------------------------------------
if __name__ == "__main__":
    rng = jax.random.PRNGKey(0)
    keys = jax.random.split(rng, 10)

    SEQ, BATCH, E = 16, 2, EMBED_DIMS
    query = jax.random.normal(keys[0], (SEQ, BATCH, E), dtype=jnp.float32)

    s = 0.1  # deterministic synthetic weights (torch Linear convention: (out, in))
    params = {
        "wq": jax.random.normal(keys[1], (E, E), jnp.float32) * s,
        "bq": jax.random.normal(keys[2], (E,), jnp.float32) * s,
        "wk": jax.random.normal(keys[3], (E, E), jnp.float32) * s,
        "bk": jax.random.normal(keys[4], (E,), jnp.float32) * s,
        "wv": jax.random.normal(keys[5], (E, E), jnp.float32) * s,
        "bv": jax.random.normal(keys[6], (E,), jnp.float32) * s,
        "wo": jax.random.normal(keys[7], (E, E), jnp.float32) * s,
        "bo": jax.random.normal(keys[8], (E,), jnp.float32) * s,
    }

    out = multihead_reliable_attention(query, params)
    out = jax.block_until_ready(out)

    ref = reference_forward(query, params)
    assert out.shape == (SEQ, BATCH, E)
    max_diff = float(jnp.max(jnp.abs(out - ref)))
    assert jnp.allclose(out, ref, atol=1e-4, rtol=1e-4), (
        "max abs diff %e" % max_diff)

    print("KERNEL_OK")
</pallas_src>

<mosaic_0001>
module attributes {stable_mosaic.version = 11 : i64} {
  func.func @_fused_kernel(%arg0: i32, %arg1: i32, %arg2: memref<1x1x128xf32, #tpu.memory_space<vmem>>, %arg3: memref<1x16x128xf32, #tpu.memory_space<vmem>>, %arg4: memref<1x16x128xf32, #tpu.memory_space<vmem>>, %arg5: memref<1x16x128xf32, #tpu.memory_space<vmem>>, %arg6: memref<1x16x128xf32, #tpu.memory_space<vmem>>, %arg7: memref<128x512xf32, #tpu.memory_space<vmem>>, %arg8: memref<1x512xf32, #tpu.memory_space<vmem>>, %arg9: memref<128x512xf32, #tpu.memory_space<vmem>>, %arg10: memref<1x16x128xf32, #tpu.memory_space<vmem>>, %arg11: memref<128x128xf32, #tpu.memory_space<vmem>>, %arg12: memref<128x128xf32, #tpu.memory_space<vmem>>) attributes {dimension_semantics = [#tpu.dimension_semantics<parallel>, #tpu.dimension_semantics<arbitrary>], iteration_bounds = array<i64: 1, 1>, scalar_prefetch = 0 : i64, scratch_operands = 2 : i64, tpu.core_type = #tpu.core_type<tc>, window_params = [{transform_indices = @transform_0, window_bounds = array<i64: 1, 1, 128>}, {transform_indices = @transform_1, window_bounds = array<i64: 1, 16, 128>}, {transform_indices = @transform_2, window_bounds = array<i64: 1, 16, 128>}, {transform_indices = @transform_3, window_bounds = array<i64: 1, 16, 128>}, {transform_indices = @transform_4, window_bounds = array<i64: 1, 16, 128>}, {pipeline_mode = #tpu.pipeline_mode<synchronous>, transform_indices = @transform_5, window_bounds = array<i64: 128, 512>}, {pipeline_mode = #tpu.pipeline_mode<synchronous>, transform_indices = @transform_6, window_bounds = array<i64: 1, 512>}, {pipeline_mode = #tpu.pipeline_mode<synchronous>, transform_indices = @transform_7, window_bounds = array<i64: 128, 512>}, {transform_indices = @transform_8, window_bounds = array<i64: 1, 16, 128>}]} {
    %c0 = arith.constant 0 : index
    %c0_0 = arith.constant 0 : index
    %0 = vector.load %arg9[%c0, %c0_0] : memref<128x512xf32, #tpu.memory_space<vmem>>, vector<128x128xf32>
    %c0_1 = arith.constant 0 : index
    %c128 = arith.constant 128 : index
    %1 = vector.load %arg9[%c0_1, %c128] : memref<128x512xf32, #tpu.memory_space<vmem>>, vector<128x128xf32>
    %c0_2 = arith.constant 0 : index
    %c256 = arith.constant 256 : index
    %2 = vector.load %arg9[%c0_2, %c256] : memref<128x512xf32, #tpu.memory_space<vmem>>, vector<128x128xf32>
    %c0_3 = arith.constant 0 : index
    %c384 = arith.constant 384 : index
    %3 = vector.load %arg9[%c0_3, %c384] : memref<128x512xf32, #tpu.memory_space<vmem>>, vector<128x128xf32>
    %c0_i32 = arith.constant 0 : i32
    %4 = arith.cmpi eq, %arg1, %c0_i32 : i32
    %5 = arith.extui %4 : i1 to i32
    %c0_i32_4 = arith.constant 0 : i32
    %6 = arith.cmpi ne, %5, %c0_i32_4 : i32
    scf.if %6 {
      %c0_34 = arith.constant 0 : index
      %c0_35 = arith.constant 0 : index
      %c0_36 = arith.constant 0 : index
      %41 = vector.load %arg4[%c0_34, %c0_35, %c0_36] : memref<1x16x128xf32, #tpu.memory_space<vmem>>, vector<1x16x128xf32>
      %42 = vector.shape_cast %41 : vector<1x16x128xf32> to vector<16x128xf32>
      %c0_37 = arith.constant 0 : index
      %c128_38 = arith.constant 128 : index
      %43 = vector.load %arg7[%c0_37, %c128_38] : memref<128x512xf32, #tpu.memory_space<vmem>>, vector<128x128xf32>
      %cst_39 = arith.constant dense<0.000000e+00> : vector<16x128xf32>
      %44 = tpu.matmul %42, %43, %cst_39 {dimension_numbers = #tpu.dot_dimension_numbers<[1], [0], [0], [1], [0, 0, 1, 1], [], []>} : vector<16x128xf32>, vector<128x128xf32>, vector<16x128xf32> -> vector<16x128xf32>
      %c0_40 = arith.constant 0 : index
      %c128_41 = arith.constant 128 : index
      %45 = vector.load %arg8[%c0_40, %c128_41] : memref<1x512xf32, #tpu.memory_space<vmem>>, vector<1x128xf32>
      %46 = vector.broadcast %45 : vector<1x128xf32> to vector<16x128xf32>
      %47 = arith.addf %44, %46 : vector<16x128xf32>
      %c0_42 = arith.constant 0 : index
      %c0_43 = arith.constant 0 : index
      %c0_44 = arith.constant 0 : index
      %48 = vector.load %arg5[%c0_42, %c0_43, %c0_44] : memref<1x16x128xf32, #tpu.memory_space<vmem>>, vector<1x16x128xf32>
      %49 = vector.shape_cast %48 : vector<1x16x128xf32> to vector<16x128xf32>
      %c0_45 = arith.constant 0 : index
      %c256_46 = arith.constant 256 : index
      %50 = vector.load %arg7[%c0_45, %c256_46] : memref<128x512xf32, #tpu.memory_space<vmem>>, vector<128x128xf32>
      %cst_47 = arith.constant dense<0.000000e+00> : vector<16x128xf32>
      %51 = tpu.matmul %49, %50, %cst_47 {dimension_numbers = #tpu.dot_dimension_numbers<[1], [0], [0], [1], [0, 0, 1, 1], [], []>} : vector<16x128xf32>, vector<128x128xf32>, vector<16x128xf32> -> vector<16x128xf32>
      %c0_48 = arith.constant 0 : index
      %c256_49 = arith.constant 256 : index
      %52 = vector.load %arg8[%c0_48, %c256_49] : memref<1x512xf32, #tpu.memory_space<vmem>>, vector<1x128xf32>
      %53 = vector.broadcast %52 : vector<1x128xf32> to vector<16x128xf32>
      %54 = arith.addf %51, %53 : vector<16x128xf32>
      %c0_50 = arith.constant 0 : index
      %c0_51 = arith.constant 0 : index
      %c0_52 = arith.constant 0 : index
      %55 = vector.load %arg2[%c0_50, %c0_51, %c0_52] : memref<1x1x128xf32, #tpu.memory_space<vmem>>, vector<1x1x128xf32>
      %56 = vector.shape_cast %55 : vector<1x1x128xf32> to vector<1x128xf32>
      %57 = vector.broadcast %56 : vector<1x128xf32> to vector<16x128xf32>
      %58 = arith.mulf %47, %57 : vector<16x128xf32>
      %cst_53 = arith.constant dense<0.000000e+00> : vector<16x128xf32>
      %59 = tpu.matmul %58, %0, %cst_53 {dimension_numbers = #tpu.dot_dimension_numbers<[1], [0], [0], [1], [0, 0, 1, 1], [], []>} : vector<16x128xf32>, vector<128x128xf32>, vector<16x128xf32> -> vector<16x128xf32>
      %60 = tpu.iota {dimensions = array<i32: 0>} : vector<16x128xi32>
      %61 = arith.sitofp %60 : vector<16x128xi32> to vector<16x128xf32>
      %62 = tpu.iota {dimensions = array<i32: 1>} : vector<1x128xi32>
      %c7_i32 = arith.constant 7 : i32
      %63 = vector.broadcast %c7_i32 : i32 to vector<1x128xi32>
      %64 = arith.andi %62, %63 : vector<1x128xi32>
      %cst_54 = arith.constant 0.000000e+00 : f32
      %65 = vector.broadcast %cst_54 : f32 to vector<16x128xf32>
      %cst_55 = arith.constant 1.600000e+01 : f32
      %cst_56 = arith.constant -1.000000e+30 : f32
      %c0_i32_57 = arith.constant 0 : i32
      %cst_58 = arith.constant dense<0xFF800000> : vector<128xf32>
      %66 = vector.multi_reduction <maximumf>, %59, %cst_58 [0] : vector<16x128xf32> to vector<128xf32>
      %67 = vector.shape_cast %66 : vector<128xf32> to vector<1x128xf32>
      %68 = vector.broadcast %67 : vector<1x128xf32> to vector<16x128xf32>
      %69 = arith.cmpf oeq, %59, %68 : vector<16x128xf32>
      %70 = vector.broadcast %cst_55 : f32 to vector<16x128xf32>
      %71 = arith.select %69, %61, %70 : vector<16x128xi1>, vector<16x128xf32>
      %cst_59 = arith.constant dense<0x7F800000> : vector<128xf32>
      %72 = vector.multi_reduction <minimumf>, %71, %cst_59 [0] : vector<16x128xf32> to vector<128xf32>
      %73 = vector.shape_cast %72 : vector<128xf32> to vector<1x128xf32>
      %74 = vector.broadcast %73 : vector<1x128xf32> to vector<16x128xf32>
      %75 = arith.cmpf oeq, %61, %74 : vector<16x128xf32>
      %76 = vector.broadcast %c0_i32_57 : i32 to vector<1x128xi32>
      %77 = arith.cmpi eq, %64, %76 : vector<1x128xi32>
      %78 = vector.broadcast %77 : vector<1x128xi1> to vector<16x128xi1>
      %79 = arith.andi %75, %78 : vector<16x128xi1>
      %cst_60 = arith.constant 1.000000e+00 : f32
      %cst_61 = arith.constant 0.000000e+00 : f32
      %80 = vector.broadcast %cst_60 : f32 to vector<16x128xf32>
      %81 = vector.broadcast %cst_61 : f32 to vector<16x128xf32>
      %82 = arith.select %79, %80, %81 : vector<16x128xi1>, vector<16x128xf32>
      %83 = arith.addf %65, %82 : vector<16x128xf32>
      %84 = vector.broadcast %cst_56 : f32 to vector<16x128xf32>
      %85 = arith.select %75, %84, %59 : vector<16x128xi1>, vector<16x128xf32>
      %c1_i32 = arith.constant 1 : i32
      %cst_62 = arith.constant dense<0xFF800000> : vector<128xf32>
      %86 = vector.multi_reduction <maximumf>, %85, %cst_62 [0] : vector<16x128xf32> to vector<128xf32>
      %87 = vector.shape_cast %86 : vector<128xf32> to vector<1x128xf32>
      %88 = vector.broadcast %87 : vector<1x128xf32> to vector<16x128xf32>
      %89 = arith.cmpf oeq, %85, %88 : vector<16x128xf32>
      %90 = vector.broadcast %cst_55 : f32 to vector<16x128xf32>
      %91 = arith.select %89, %61, %90 : vector<16x128xi1>, vector<16x128xf32>
      %cst_63 = arith.constant dense<0x7F800000> : vector<128xf32>
      %92 = vector.multi_reduction <minimumf>, %91, %cst_63 [0] : vector<16x128xf32> to vector<128xf32>
      %93 = vector.shape_cast %92 : vector<128xf32> to vector<1x128xf32>
      %94 = vector.broadcast %93 : vector<1x128xf32> to vector<16x128xf32>
      %95 = arith.cmpf oeq, %61, %94 : vector<16x128xf32>
      %96 = vector.broadcast %c1_i32 : i32 to vector<1x128xi32>
      %97 = arith.cmpi eq, %64, %96 : vector<1x128xi32>
      %98 = vector.broadcast %97 : vector<1x128xi1> to vector<16x128xi1>
      %99 = arith.andi %95, %98 : vector<16x128xi1>
      %cst_64 = arith.constant 1.000000e+00 : f32
      %cst_65 = arith.constant 0.000000e+00 : f32
      %100 = vector.broadcast %cst_64 : f32 to vector<16x128xf32>
      %101 = vector.broadcast %cst_65 : f32 to vector<16x128xf32>
      %102 = arith.select %99, %100, %101 : vector<16x128xi1>, vector<16x128xf32>
      %103 = arith.addf %83, %102 : vector<16x128xf32>
      %104 = vector.broadcast %cst_56 : f32 to vector<16x128xf32>
      %105 = arith.select %95, %104, %85 : vector<16x128xi1>, vector<16x128xf32>
      %c2_i32 = arith.constant 2 : i32
      %cst_66 = arith.constant dense<0xFF800000> : vector<128xf32>
      %106 = vector.multi_reduction <maximumf>, %105, %cst_66 [0] : vector<16x128xf32> to vector<128xf32>
      %107 = vector.shape_cast %106 : vector<128xf32> to vector<1x128xf32>
      %108 = vector.broadcast %107 : vector<1x128xf32> to vector<16x128xf32>
      %109 = arith.cmpf oeq, %105, %108 : vector<16x128xf32>
      %110 = vector.broadcast %cst_55 : f32 to vector<16x128xf32>
      %111 = arith.select %109, %61, %110 : vector<16x128xi1>, vector<16x128xf32>
      %cst_67 = arith.constant dense<0x7F800000> : vector<128xf32>
      %112 = vector.multi_reduction <minimumf>, %111, %cst_67 [0] : vector<16x128xf32> to vector<128xf32>
      %113 = vector.shape_cast %112 : vector<128xf32> to vector<1x128xf32>
      %114 = vector.broadcast %113 : vector<1x128xf32> to vector<16x128xf32>
      %115 = arith.cmpf oeq, %61, %114 : vector<16x128xf32>
      %116 = vector.broadcast %c2_i32 : i32 to vector<1x128xi32>
      %117 = arith.cmpi eq, %64, %116 : vector<1x128xi32>
      %118 = vector.broadcast %117 : vector<1x128xi1> to vector<16x128xi1>
      %119 = arith.andi %115, %118 : vector<16x128xi1>
      %cst_68 = arith.constant 1.000000e+00 : f32
      %cst_69 = arith.constant 0.000000e+00 : f32
      %120 = vector.broadcast %cst_68 : f32 to vector<16x128xf32>
      %121 = vector.broadcast %cst_69 : f32 to vector<16x128xf32>
      %122 = arith.select %119, %120, %121 : vector<16x128xi1>, vector<16x128xf32>
      %123 = arith.addf %103, %122 : vector<16x128xf32>
      %124 = vector.broadcast %cst_56 : f32 to vector<16x128xf32>
      %125 = arith.select %115, %124, %105 : vector<16x128xi1>, vector<16x128xf32>
      %c3_i32 = arith.constant 3 : i32
      %cst_70 = arith.constant dense<0xFF800000> : vector<128xf32>
      %126 = vector.multi_reduction <maximumf>, %125, %cst_70 [0] : vector<16x128xf32> to vector<128xf32>
      %127 = vector.shape_cast %126 : vector<128xf32> to vector<1x128xf32>
      %128 = vector.broadcast %127 : vector<1x128xf32> to vector<16x128xf32>
      %129 = arith.cmpf oeq, %125, %128 : vector<16x128xf32>
      %130 = vector.broadcast %cst_55 : f32 to vector<16x128xf32>
      %131 = arith.select %129, %61, %130 : vector<16x128xi1>, vector<16x128xf32>
      %cst_71 = arith.constant dense<0x7F800000> : vector<128xf32>
      %132 = vector.multi_reduction <minimumf>, %131, %cst_71 [0] : vector<16x128xf32> to vector<128xf32>
      %133 = vector.shape_cast %132 : vector<128xf32> to vector<1x128xf32>
      %134 = vector.broadcast %133 : vector<1x128xf32> to vector<16x128xf32>
      %135 = arith.cmpf oeq, %61, %134 : vector<16x128xf32>
      %136 = vector.broadcast %c3_i32 : i32 to vector<1x128xi32>
      %137 = arith.cmpi eq, %64, %136 : vector<1x128xi32>
      %138 = vector.broadcast %137 : vector<1x128xi1> to vector<16x128xi1>
      %139 = arith.andi %135, %138 : vector<16x128xi1>
      %cst_72 = arith.constant 1.000000e+00 : f32
      %cst_73 = arith.constant 0.000000e+00 : f32
      %140 = vector.broadcast %cst_72 : f32 to vector<16x128xf32>
      %141 = vector.broadcast %cst_73 : f32 to vector<16x128xf32>
      %142 = arith.select %139, %140, %141 : vector<16x128xi1>, vector<16x128xf32>
      %143 = arith.addf %123, %142 : vector<16x128xf32>
      %144 = vector.broadcast %cst_56 : f32 to vector<16x128xf32>
      %145 = arith.select %135, %144, %125 : vector<16x128xi1>, vector<16x128xf32>
      %c4_i32 = arith.constant 4 : i32
      %cst_74 = arith.constant dense<0xFF800000> : vector<128xf32>
      %146 = vector.multi_reduction <maximumf>, %145, %cst_74 [0] : vector<16x128xf32> to vector<128xf32>
      %147 = vector.shape_cast %146 : vector<128xf32> to vector<1x128xf32>
      %148 = vector.broadcast %147 : vector<1x128xf32> to vector<16x128xf32>
      %149 = arith.cmpf oeq, %145, %148 : vector<16x128xf32>
      %150 = vector.broadcast %cst_55 : f32 to vector<16x128xf32>
      %151 = arith.select %149, %61, %150 : vector<16x128xi1>, vector<16x128xf32>
      %cst_75 = arith.constant dense<0x7F800000> : vector<128xf32>
      %152 = vector.multi_reduction <minimumf>, %151, %cst_75 [0] : vector<16x128xf32> to vector<128xf32>
      %153 = vector.shape_cast %152 : vector<128xf32> to vector<1x128xf32>
      %154 = vector.broadcast %153 : vector<1x128xf32> to vector<16x128xf32>
      %155 = arith.cmpf oeq, %61, %154 : vector<16x128xf32>
      %156 = vector.broadcast %c4_i32 : i32 to vector<1x128xi32>
      %157 = arith.cmpi eq, %64, %156 : vector<1x128xi32>
      %158 = vector.broadcast %157 : vector<1x128xi1> to vector<16x128xi1>
      %159 = arith.andi %155, %158 : vector<16x128xi1>
      %cst_76 = arith.constant 1.000000e+00 : f32
      %cst_77 = arith.constant 0.000000e+00 : f32
      %160 = vector.broadcast %cst_76 : f32 to vector<16x128xf32>
      %161 = vector.broadcast %cst_77 : f32 to vector<16x128xf32>
      %162 = arith.select %159, %160, %161 : vector<16x128xi1>, vector<16x128xf32>
      %163 = arith.addf %143, %162 : vector<16x128xf32>
      %164 = vector.broadcast %cst_56 : f32 to vector<16x128xf32>
      %165 = arith.select %155, %164, %145 : vector<16x128xi1>, vector<16x128xf32>
      %c5_i32 = arith.constant 5 : i32
      %cst_78 = arith.constant dense<0xFF800000> : vector<128xf32>
      %166 = vector.multi_reduction <maximumf>, %165, %cst_78 [0] : vector<16x128xf32> to vector<128xf32>
      %167 = vector.shape_cast %166 : vector<128xf32> to vector<1x128xf32>
      %168 = vector.broadcast %167 : vector<1x128xf32> to vector<16x128xf32>
      %169 = arith.cmpf oeq, %165, %168 : vector<16x128xf32>
      %170 = vector.broadcast %cst_55 : f32 to vector<16x128xf32>
      %171 = arith.select %169, %61, %170 : vector<16x128xi1>, vector<16x128xf32>
      %cst_79 = arith.constant dense<0x7F800000> : vector<128xf32>
      %172 = vector.multi_reduction <minimumf>, %171, %cst_79 [0] : vector<16x128xf32> to vector<128xf32>
      %173 = vector.shape_cast %172 : vector<128xf32> to vector<1x128xf32>
      %174 = vector.broadcast %173 : vector<1x128xf32> to vector<16x128xf32>
      %175 = arith.cmpf oeq, %61, %174 : vector<16x128xf32>
      %176 = vector.broadcast %c5_i32 : i32 to vector<1x128xi32>
      %177 = arith.cmpi eq, %64, %176 : vector<1x128xi32>
      %178 = vector.broadcast %177 : vector<1x128xi1> to vector<16x128xi1>
      %179 = arith.andi %175, %178 : vector<16x128xi1>
      %cst_80 = arith.constant 1.000000e+00 : f32
      %cst_81 = arith.constant 0.000000e+00 : f32
      %180 = vector.broadcast %cst_80 : f32 to vector<16x128xf32>
      %181 = vector.broadcast %cst_81 : f32 to vector<16x128xf32>
      %182 = arith.select %179, %180, %181 : vector<16x128xi1>, vector<16x128xf32>
      %183 = arith.addf %163, %182 : vector<16x128xf32>
      %184 = vector.broadcast %cst_56 : f32 to vector<16x128xf32>
      %185 = arith.select %175, %184, %165 : vector<16x128xi1>, vector<16x128xf32>
      %c6_i32 = arith.constant 6 : i32
      %cst_82 = arith.constant dense<0xFF800000> : vector<128xf32>
      %186 = vector.multi_reduction <maximumf>, %185, %cst_82 [0] : vector<16x128xf32> to vector<128xf32>
      %187 = vector.shape_cast %186 : vector<128xf32> to vector<1x128xf32>
      %188 = vector.broadcast %187 : vector<1x128xf32> to vector<16x128xf32>
      %189 = arith.cmpf oeq, %185, %188 : vector<16x128xf32>
      %190 = vector.broadcast %cst_55 : f32 to vector<16x128xf32>
      %191 = arith.select %189, %61, %190 : vector<16x128xi1>, vector<16x128xf32>
      %cst_83 = arith.constant dense<0x7F800000> : vector<128xf32>
      %192 = vector.multi_reduction <minimumf>, %191, %cst_83 [0] : vector<16x128xf32> to vector<128xf32>
      %193 = vector.shape_cast %192 : vector<128xf32> to vector<1x128xf32>
      %194 = vector.broadcast %193 : vector<1x128xf32> to vector<16x128xf32>
      %195 = arith.cmpf oeq, %61, %194 : vector<16x128xf32>
      %196 = vector.broadcast %c6_i32 : i32 to vector<1x128xi32>
      %197 = arith.cmpi eq, %64, %196 : vector<1x128xi32>
      %198 = vector.broadcast %197 : vector<1x128xi1> to vector<16x128xi1>
      %199 = arith.andi %195, %198 : vector<16x128xi1>
      %cst_84 = arith.constant 1.000000e+00 : f32
      %cst_85 = arith.constant 0.000000e+00 : f32
      %200 = vector.broadcast %cst_84 : f32 to vector<16x128xf32>
      %201 = vector.broadcast %cst_85 : f32 to vector<16x128xf32>
      %202 = arith.select %199, %200, %201 : vector<16x128xi1>, vector<16x128xf32>
      %203 = arith.addf %183, %202 : vector<16x128xf32>
      %204 = vector.broadcast %cst_56 : f32 to vector<16x128xf32>
      %205 = arith.select %195, %204, %185 : vector<16x128xi1>, vector<16x128xf32>
      %c7_i32_86 = arith.constant 7 : i32
      %cst_87 = arith.constant dense<0xFF800000> : vector<128xf32>
      %206 = vector.multi_reduction <maximumf>, %205, %cst_87 [0] : vector<16x128xf32> to vector<128xf32>
      %207 = vector.shape_cast %206 : vector<128xf32> to vector<1x128xf32>
      %208 = vector.broadcast %207 : vector<1x128xf32> to vector<16x128xf32>
      %209 = arith.cmpf oeq, %205, %208 : vector<16x128xf32>
      %210 = vector.broadcast %cst_55 : f32 to vector<16x128xf32>
      %211 = arith.select %209, %61, %210 : vector<16x128xi1>, vector<16x128xf32>
      %cst_88 = arith.constant dense<0x7F800000> : vector<128xf32>
      %212 = vector.multi_reduction <minimumf>, %211, %cst_88 [0] : vector<16x128xf32> to vector<128xf32>
      %213 = vector.shape_cast %212 : vector<128xf32> to vector<1x128xf32>
      %214 = vector.broadcast %213 : vector<1x128xf32> to vector<16x128xf32>
      %215 = arith.cmpf oeq, %61, %214 : vector<16x128xf32>
      %216 = vector.broadcast %c7_i32_86 : i32 to vector<1x128xi32>
      %217 = arith.cmpi eq, %64, %216 : vector<1x128xi32>
      %218 = vector.broadcast %217 : vector<1x128xi1> to vector<16x128xi1>
      %219 = arith.andi %215, %218 : vector<16x128xi1>
      %cst_89 = arith.constant 1.000000e+00 : f32
      %cst_90 = arith.constant 0.000000e+00 : f32
      %220 = vector.broadcast %cst_89 : f32 to vector<16x128xf32>
      %221 = vector.broadcast %cst_90 : f32 to vector<16x128xf32>
      %222 = arith.select %219, %220, %221 : vector<16x128xi1>, vector<16x128xf32>
      %223 = arith.addf %203, %222 : vector<16x128xf32>
      %224 = vector.broadcast %cst_56 : f32 to vector<16x128xf32>
      %225 = arith.select %215, %224, %205 : vector<16x128xi1>, vector<16x128xf32>
      %c8_i32 = arith.constant 8 : i32
      %226 = tpu.transpose %47, [1, 0] : vector<16x128xf32> -> vector<128x16xf32>
      %cst_91 = arith.constant dense<0.000000e+00> : vector<128x128xf32>
      %227 = tpu.matmul %226, %223, %cst_91 {dimension_numbers = #tpu.dot_dimension_numbers<[1], [0], [0], [1], [0, 0, 1, 1], [], []>} : vector<128x16xf32>, vector<16x128xf32>, vector<128x128xf32> -> vector<128x128xf32>
      %228 = arith.mulf %0, %227 : vector<128x128xf32>
      %c0_92 = arith.constant 0 : index
      %c0_93 = arith.constant 0 : index
      %229 = vector.load %arg11[%c0_92, %c0_93] : memref<128x128xf32, #tpu.memory_space<vmem>>, vector<128x128xf32>
      tpu.vector_store %arg11[%c0_92, %c0_93], %228 {strides = array<i32>} : memref<128x128xf32, #tpu.memory_space<vmem>>, vector<128x128xf32>,
      %cst_94 = arith.constant dense<0.000000e+00> : vector<16x128xf32>
      %230 = tpu.matmul %47, %228, %cst_94 {dimension_numbers = #tpu.dot_dimension_numbers<[1], [0], [0], [1], [0, 0, 1, 1], [], []>} : vector<16x128xf32>, vector<128x128xf32>, vector<16x128xf32> -> vector<16x128xf32>
      %cst_95 = arith.constant 0.353553385 : f32
      %231 = vector.broadcast %cst_95 : f32 to vector<16x128xf32>
      %232 = arith.mulf %230, %231 : vector<16x128xf32>
      %cst_96 = arith.constant dense<0.000000e+00> : vector<16x128xf32>
      %233 = tpu.matmul %232, %1, %cst_96 {dimension_numbers = #tpu.dot_dimension_numbers<[1], [0], [0], [1], [0, 0, 1, 1], [], []>} : vector<16x128xf32>, vector<128x128xf32>, vector<16x128xf32> -> vector<16x128xf32>
      %234 = arith.maximumf %232, %233 : vector<16x128xf32>
      %cst_97 = arith.constant dense<0.000000e+00> : vector<16x128xf32>
      %235 = tpu.matmul %234, %2, %cst_97 {dimension_numbers = #tpu.dot_dimension_numbers<[1], [0], [0], [1], [0, 0, 1, 1], [], []>} : vector<16x128xf32>, vector<128x128xf32>, vector<16x128xf32> -> vector<16x128xf32>
      %236 = arith.maximumf %234, %235 : vector<16x128xf32>
      %cst_98 = arith.constant dense<0.000000e+00> : vector<16x128xf32>
      %237 = tpu.matmul %236, %3, %cst_98 {dimension_numbers = #tpu.dot_dimension_numbers<[1], [0], [0], [1], [0, 0, 1, 1], [], []>} : vector<16x128xf32>, vector<128x128xf32>, vector<16x128xf32> -> vector<16x128xf32>
      %238 = arith.maximumf %236, %237 : vector<16x128xf32>
      %239 = arith.subf %232, %238 : vector<16x128xf32>
      %240 = math.exp %239 : vector<16x128xf32>
      %cst_99 = arith.constant dense<0.000000e+00> : vector<16x128xf32>
      %241 = tpu.matmul %240, %0, %cst_99 {dimension_numbers = #tpu.dot_dimension_numbers<[1], [0], [0], [1], [0, 0, 1, 1], [], []>} : vector<16x128xf32>, vector<128x128xf32>, vector<16x128xf32> -> vector<16x128xf32>
      %242 = arith.divf %240, %241 : vector<16x128xf32>
      %243 = tpu.transpose %242, [1, 0] : vector<16x128xf32> -> vector<128x16xf32>
      %cst_100 = arith.constant dense<0.000000e+00> : vector<128x128xf32>
      %244 = tpu.matmul %243, %54, %cst_100 {dimension_numbers = #tpu.dot_dimension_numbers<[1], [0], [0], [1], [0, 0, 1, 1], [], []>} : vector<128x16xf32>, vector<16x128xf32>, vector<128x128xf32> -> vector<128x128xf32>
      %245 = arith.mulf %0, %244 : vector<128x128xf32>
      %c0_101 = arith.constant 0 : index
      %c0_102 = arith.constant 0 : index
      %246 = vector.load %arg12[%c0_101, %c0_102] : memref<128x128xf32, #tpu.memory_space<vmem>>, vector<128x128xf32>
      tpu.vector_store %arg12[%c0_101, %c0_102], %245 {strides = array<i32>} : memref<128x128xf32, #tpu.memory_space<vmem>>, vector<128x128xf32>,
    } else {
    }
    %c0_5 = arith.constant 0 : index
    %c0_6 = arith.constant 0 : index
    %c0_7 = arith.constant 0 : index
    %7 = vector.load %arg3[%c0_5, %c0_6, %c0_7] : memref<1x16x128xf32, #tpu.memory_space<vmem>>, vector<1x16x128xf32>
    %8 = vector.shape_cast %7 : vector<1x16x128xf32> to vector<16x128xf32>
    %c0_8 = arith.constant 0 : index
    %c0_9 = arith.constant 0 : index
    %9 = vector.load %arg7[%c0_8, %c0_9] : memref<128x512xf32, #tpu.memory_space<vmem>>, vector<128x128xf32>
    %cst = arith.constant dense<0.000000e+00> : vector<16x128xf32>
    %10 = tpu.matmul %8, %9, %cst {dimension_numbers = #tpu.dot_dimension_numbers<[1], [0], [0], [1], [0, 0, 1, 1], [], []>} : vector<16x128xf32>, vector<128x128xf32>, vector<16x128xf32> -> vector<16x128xf32>
    %c0_10 = arith.constant 0 : index
    %c0_11 = arith.constant 0 : index
    %11 = vector.load %arg8[%c0_10, %c0_11] : memref<1x512xf32, #tpu.memory_space<vmem>>, vector<1x128xf32>
    %12 = vector.broadcast %11 : vector<1x128xf32> to vector<16x128xf32>
    %13 = arith.addf %10, %12 : vector<16x128xf32>
    %c0_12 = arith.constant 0 : index
    %c0_13 = arith.constant 0 : index
    %14 = vector.load %arg11[%c0_12, %c0_13] : memref<128x128xf32, #tpu.memory_space<vmem>>, vector<128x128xf32>
    %cst_14 = arith.constant dense<0.000000e+00> : vector<16x128xf32>
    %15 = tpu.matmul %13, %14, %cst_14 {dimension_numbers = #tpu.dot_dimension_numbers<[1], [0], [0], [1], [0, 0, 1, 1], [], []>} : vector<16x128xf32>, vector<128x128xf32>, vector<16x128xf32> -> vector<16x128xf32>
    %cst_15 = arith.constant 0.353553385 : f32
    %16 = vector.broadcast %cst_15 : f32 to vector<16x128xf32>
    %17 = arith.mulf %15, %16 : vector<16x128xf32>
    %cst_16 = arith.constant dense<0.000000e+00> : vector<16x128xf32>
    %18 = tpu.matmul %17, %1, %cst_16 {dimension_numbers = #tpu.dot_dimension_numbers<[1], [0], [0], [1], [0, 0, 1, 1], [], []>} : vector<16x128xf32>, vector<128x128xf32>, vector<16x128xf32> -> vector<16x128xf32>
    %19 = arith.maximumf %17, %18 : vector<16x128xf32>
    %cst_17 = arith.constant dense<0.000000e+00> : vector<16x128xf32>
    %20 = tpu.matmul %19, %2, %cst_17 {dimension_numbers = #tpu.dot_dimension_numbers<[1], [0], [0], [1], [0, 0, 1, 1], [], []>} : vector<16x128xf32>, vector<128x128xf32>, vector<16x128xf32> -> vector<16x128xf32>
    %21 = arith.maximumf %19, %20 : vector<16x128xf32>
    %cst_18 = arith.constant dense<0.000000e+00> : vector<16x128xf32>
    %22 = tpu.matmul %21, %3, %cst_18 {dimension_numbers = #tpu.dot_dimension_numbers<[1], [0], [0], [1], [0, 0, 1, 1], [], []>} : vector<16x128xf32>, vector<128x128xf32>, vector<16x128xf32> -> vector<16x128xf32>
    %23 = arith.maximumf %21, %22 : vector<16x128xf32>
    %24 = arith.subf %17, %23 : vector<16x128xf32>
    %25 = math.exp %24 : vector<16x128xf32>
    %cst_19 = arith.constant dense<0.000000e+00> : vector<16x128xf32>
    %26 = tpu.matmul %25, %0, %cst_19 {dimension_numbers = #tpu.dot_dimension_numbers<[1], [0], [0], [1], [0, 0, 1, 1], [], []>} : vector<16x128xf32>, vector<128x128xf32>, vector<16x128xf32> -> vector<16x128xf32>
    %27 = arith.divf %25, %26 : vector<16x128xf32>
    %c0_20 = arith.constant 0 : index
    %c0_21 = arith.constant 0 : index
    %28 = vector.load %arg12[%c0_20, %c0_21] : memref<128x128xf32, #tpu.memory_space<vmem>>, vector<128x128xf32>
    %cst_22 = arith.constant dense<0.000000e+00> : vector<16x128xf32>
    %29 = tpu.matmul %27, %28, %cst_22 {dimension_numbers = #tpu.dot_dimension_numbers<[1], [0], [0], [1], [0, 0, 1, 1], [], []>} : vector<16x128xf32>, vector<128x128xf32>, vector<16x128xf32> -> vector<16x128xf32>
    %c0_23 = arith.constant 0 : index
    %c384_24 = arith.constant 384 : index
    %30 = vector.load %arg7[%c0_23, %c384_24] : memref<128x512xf32, #tpu.memory_space<vmem>>, vector<128x128xf32>
    %cst_25 = arith.constant dense<0.000000e+00> : vector<16x128xf32>
    %31 = tpu.matmul %29, %30, %cst_25 {dimension_numbers = #tpu.dot_dimension_numbers<[1], [0], [0], [1], [0, 0, 1, 1], [], []>} : vector<16x128xf32>, vector<128x128xf32>, vector<16x128xf32> -> vector<16x128xf32>
    %c0_26 = arith.constant 0 : index
    %c384_27 = arith.constant 384 : index
    %32 = vector.load %arg8[%c0_26, %c384_27] : memref<1x512xf32, #tpu.memory_space<vmem>>, vector<1x128xf32>
    %33 = vector.broadcast %32 : vector<1x128xf32> to vector<16x128xf32>
    %34 = arith.addf %31, %33 : vector<16x128xf32>
    %c0_28 = arith.constant 0 : index
    %c0_29 = arith.constant 0 : index
    %c0_30 = arith.constant 0 : index
    %35 = vector.load %arg6[%c0_28, %c0_29, %c0_30] : memref<1x16x128xf32, #tpu.memory_space<vmem>>, vector<1x16x128xf32>
    %36 = vector.shape_cast %35 : vector<1x16x128xf32> to vector<16x128xf32>
    %37 = arith.addf %36, %34 : vector<16x128xf32>
    %c0_31 = arith.constant 0 : index
    %c0_32 = arith.constant 0 : index
    %c0_33 = arith.constant 0 : index
    %38 = vector.load %arg10[%c0_31, %c0_32, %c0_33] : memref<1x16x128xf32, #tpu.memory_space<vmem>>, vector<1x16x128xf32>
    %39 = vector.shape_cast %38 : vector<1x16x128xf32> to vector<16x128xf32>
    %40 = vector.shape_cast %37 : vector<16x128xf32> to vector<1x16x128xf32>
    tpu.vector_store %arg10[%c0_31, %c0_32, %c0_33], %40 {strides = array<i32>} : memref<1x16x128xf32, #tpu.memory_space<vmem>>, vector<1x16x128xf32>,
    return
  }
  func.func @transform_0(%arg0: i32, %arg1: i32) -> (i32, i32, i32) {
    %c0_i32 = arith.constant 0 : i32
    %c0_i32_0 = arith.constant 0 : i32
    %c0_i32_1 = arith.constant 0 : i32
    return %arg0, %c0_i32, %c0_i32_0 : i32, i32, i32
  }
  func.func @transform_1(%arg0: i32, %arg1: i32) -> (i32, i32, i32) {
    %c0_i32 = arith.constant 0 : i32
    %c0_i32_0 = arith.constant 0 : i32
    return %arg0, %arg1, %c0_i32 : i32, i32, i32
  }
  func.func @transform_2(%arg0: i32, %arg1: i32) -> (i32, i32, i32) {
    %c0_i32 = arith.constant 0 : i32
    %c0_i32_0 = arith.constant 0 : i32
    %c0_i32_1 = arith.constant 0 : i32
    return %arg0, %c0_i32, %c0_i32_0 : i32, i32, i32
  }
  func.func @transform_3(%arg0: i32, %arg1: i32) -> (i32, i32, i32) {
    %c0_i32 = arith.constant 0 : i32
    %c0_i32_0 = arith.constant 0 : i32
    %c0_i32_1 = arith.constant 0 : i32
    return %arg0, %c0_i32, %c0_i32_0 : i32, i32, i32
  }
  func.func @transform_4(%arg0: i32, %arg1: i32) -> (i32, i32, i32) {
    %c0_i32 = arith.constant 0 : i32
    %c0_i32_0 = arith.constant 0 : i32
    return %arg0, %arg1, %c0_i32 : i32, i32, i32
  }
  func.func @transform_5(%arg0: i32, %arg1: i32) -> (i32, i32) {
    %c0_i32 = arith.constant 0 : i32
    %c0_i32_0 = arith.constant 0 : i32
    %c0_i32_1 = arith.constant 0 : i32
    return %c0_i32, %c0_i32_0 : i32, i32
  }
  func.func @transform_6(%arg0: i32, %arg1: i32) -> (i32, i32) {
    %c0_i32 = arith.constant 0 : i32
    %c0_i32_0 = arith.constant 0 : i32
    %c0_i32_1 = arith.constant 0 : i32
    return %c0_i32, %c0_i32_0 : i32, i32
  }
  func.func @transform_7(%arg0: i32, %arg1: i32) -> (i32, i32) {
    %c0_i32 = arith.constant 0 : i32
    %c0_i32_0 = arith.constant 0 : i32
    %c0_i32_1 = arith.constant 0 : i32
    return %c0_i32, %c0_i32_0 : i32, i32
  }
  func.func @transform_8(%arg0: i32, %arg1: i32) -> (i32, i32, i32) {
    %c0_i32 = arith.constant 0 : i32
    %c0_i32_0 = arith.constant 0 : i32
    return %arg0, %arg1, %c0_i32 : i32, i32, i32
  }
}

</mosaic_0001>

<bundles_post_ra>
// kernel: tpu_custom_call.1
= control target key start
LH: loop header
LB: loop body
LE: loop exit
PB: predicated region body
PF: predicated region fallthrough
CT: control target
= control target key end

     0   :  { %13 = vsyncpa [#allocation5], 0  ;;  %s4807_s0 = inlined_call_operand.hbm [shape: f32[1,1,128], index: 0, kind: input, shape index: {}]   ;;  %s4808_s1 = inlined_call_operand.hbm [shape: f32[1,16,128], index: 1, kind: input, shape index: {}]   ;;  %s4809_s2 = inlined_call_operand.hbm [shape: f32[1,16,128], index: 2, kind: input, shape index: {}]   ;;  %s4810_s3 = inlined_call_operand.hbm [shape: f32[1,16,128], index: 3, kind: input, shape index: {}]   ;;  %s4811_s4 = inlined_call_operand.hbm [shape: f32[1,16,128], index: 4, kind: input, shape index: {}]   ;;  %s4812_s5 = inlined_call_operand.hbm [shape: f32[128,512], index: 5, kind: input, shape index: {}]   ;;  %s4813_s6 = inlined_call_operand.hbm [shape: f32[1,512], index: 6, kind: input, shape index: {}]   ;;  %s4814_s7 = inlined_call_operand.hbm [shape: f32[128,512], index: 7, kind: input, shape index: {}]   ;;  %s4815_s8 = inlined_call_operand.hbm [shape: f32[1,16,128], index: 8, kind: output, shape index: {}]  }
   0x1   :  { %14 = vsyncpa [#allocation8], 0 }
   0x2   :  { %15 = vsyncpa [#allocation11], 0 }
   0x3   :  { %16 = vsyncpa [#allocation14], 0 }
   0x4   :  { %17 = vsyncpa [#allocation17], 0 }
   0x5   :  { %18 = vsyncpa [#allocation6], 0  ;;  %s4127_s27 = smov [#allocation7]   ;;  %s3917_s9 = scalar_lea.hbm %s4808_s1, 256 }
   0x6   :  { %s34_s28 = sshll.u32 %s4127_s27, 4  ;;  %p3918_p0 = scmp.ne.s32.totalorder %s4808_s1, %s3917_s9  ;;  %s35_s28 = int_to_ptr.vmem [resolvable:$true] %s34_s28 }
   0x7   :  { %p3921_p1 = scmp.lt.u32.totalorder %s3917_s9, %s4808_s1 }
   0x9   :  { %p3923_p2 = pnand %p3921_p1, %p3918_p0 }
   0xb   :  { %3926 = shalt.err (!%p3923_p2)
}
   0xc   :  { %s3927_s14 = scalar_lea.vmem %s35_s28, 256  ;;  %p3932_p4 = scmp.lt.s32.totalorder %s35_s28, %s35_s28 }
   0xd   :  { %p3928_p3 = scmp.ne.s32.totalorder %s35_s28, %s3927_s14  ;;  %p3933_p5 = scmp.lt.s32.totalorder %s3927_s14, %s3927_s14 }
   0xf   :  { %p3934_p6 = por %p3933_p5, %p3932_p4 }
  0x11   :  { %p3935_p7 = pnand %p3934_p6, %p3928_p3 }
  0x13   :  { %3938 = shalt.err (!%p3935_p7)
}
  0x14   :  { %s4128_s15 = smov 128   ;;  %s4129_s16 = smov 8  }
  0x15   :  { %40 = dma.hbm_to_vmem [thread:$0]  %s4808_s1, 256, %s35_s28, [#allocation8], %s4128_s15, %s4128_s15, %s4129_s16  }
  0x16   :  { %s4130_s19 = smov [#allocation10]   ;;  %s4131_s21 = smov [#allocation13]  }
  0x17   :  { %s58_s20 = sshll.u32 %s4130_s19, 4  ;;  %s82_s22 = sshll.u32 %s4131_s21, 4  ;;  %s59_s20 = int_to_ptr.vmem [resolvable:$true] %s58_s20  ;;  %s83_s22 = int_to_ptr.vmem [resolvable:$true] %s82_s22 }
  0x18   :  { %s3939_s25 = scalar_lea.hbm %s4810_s3, 256 }
  0x19   :  { %p3940_p8 = scmp.ne.s32.totalorder %s4810_s3, %s3939_s25  ;;  %p3943_p9 = scmp.lt.u32.totalorder %s3939_s25, %s4810_s3 }
  0x1b   :  { %p3945_p10 = pnand %p3943_p9, %p3940_p8 }
  0x1d   :  { %3948 = shalt.err (!%p3945_p10)
}
  0x1e   :  { %s3949_s1 = scalar_lea.vmem %s59_s20, 256  ;;  %p3954_p12 = scmp.lt.s32.totalorder %s59_s20, %s59_s20 }
  0x1f   :  { %p3950_p11 = scmp.ne.s32.totalorder %s59_s20, %s3949_s1  ;;  %p3955_p13 = scmp.lt.s32.totalorder %s3949_s1, %s3949_s1 }
  0x21   :  { %p3956_p0 = por %p3955_p13, %p3954_p12 }
  0x23   :  { %p3957_p1 = pnand %p3956_p0, %p3950_p11 }
  0x25   :  { %3960 = shalt.err (!%p3957_p1)
}
  0x26   :  { %64 = dma.hbm_to_vmem [thread:$0]  %s4810_s3, 256, %s59_s20, [#allocation11], %s4128_s15, %s4128_s15, %s4129_s16  }
  0x27   :  { %s3961_s12 = scalar_lea.hbm %s4812_s5, 8192 }
  0x28   :  { %p3962_p2 = scmp.ne.s32.totalorder %s4812_s5, %s3961_s12  ;;  %p3965_p3 = scmp.lt.u32.totalorder %s3961_s12, %s4812_s5 }
  0x2a   :  { %p3967_p4 = pnand %p3965_p3, %p3962_p2 }
  0x2c   :  { %3970 = shalt.err (!%p3967_p4)
}
  0x2d   :  { %s3971_s19 = scalar_lea.vmem %s83_s22, 8192  ;;  %p3976_p6 = scmp.lt.s32.totalorder %s83_s22, %s83_s22 }
  0x2e   :  { %p3972_p5 = scmp.ne.s32.totalorder %s83_s22, %s3971_s19  ;;  %p3977_p7 = scmp.lt.s32.totalorder %s3971_s19, %s3971_s19 }
  0x30   :  { %p3978_p8 = por %p3977_p7, %p3976_p6 }
  0x32   :  { %p3979_p9 = pnand %p3978_p8, %p3972_p5 }
  0x34   :  { %3982 = shalt.err (!%p3979_p9)
}
  0x35   :  { %s4132_s3 = smov 512   ;;  %s4133_s20 = smov 32  }
  0x36   :  { %88 = dma.hbm_to_vmem [thread:$0]  %s4812_s5, 8192, %s83_s22, [#allocation14], %s4132_s3, %s4132_s3, %s4133_s20  }
  0x37   :  { %s4134_s24 = smov [#allocation4]   ;;  %s4135_s26 = smov [#allocation9]  }
  0x38   :  { %s25_s25 = sshll.u32 %s4134_s24, 4  ;;  %s46_s27 = sshll.u32 %s4135_s26, 4  ;;  %s26_s25 = int_to_ptr.vmem [resolvable:$true] %s25_s25  ;;  %s47_s27 = int_to_ptr.vmem [resolvable:$true] %s46_s27 }
  0x39   :  { %s3983_s1 = scalar_lea.hbm %s4807_s0, 16 }
  0x3a   :  { %p3984_p10 = scmp.ne.s32.totalorder %s4807_s0, %s3983_s1  ;;  %p3987_p11 = scmp.lt.u32.totalorder %s3983_s1, %s4807_s0 }
  0x3c   :  { %p3989_p12 = pnand %p3987_p11, %p3984_p10 }
  0x3e   :  { %3992 = shalt.err (!%p3989_p12)
}
  0x3f   :  { %s3993_s5 = scalar_lea.vmem %s26_s25, 16  ;;  %s3997_s22 = scalar_lea.vmem %s26_s25, 32 }
  0x40   :  { %p3994_p13 = scmp.ne.s32.totalorder %s26_s25, %s3993_s5  ;;  %p3998_p0 = scmp.lt.s32.totalorder %s26_s25, %s26_s25 }
  0x41   :  { %p3999_p1 = scmp.lt.s32.totalorder %s3997_s22, %s3993_s5 }
  0x43   :  { %p4000_p2 = por %p3999_p1, %p3998_p0 }
  0x45   :  { %p4001_p3 = pnand %p4000_p2, %p3994_p13 }
  0x47   :  { %4004 = shalt.err (!%p4001_p3)
}
  0x48   :  { %28 = dma.hbm_to_vmem [thread:$0]  %s4807_s0, 16, %s26_s25, [#allocation5]  }
  0x49   :  { %s4005_s18 = scalar_lea.hbm %s4809_s2, 256 }
  0x4a   :  { %p4006_p4 = scmp.ne.s32.totalorder %s4809_s2, %s4005_s18  ;;  %p4009_p5 = scmp.lt.u32.totalorder %s4005_s18, %s4809_s2 }
  0x4c   :  { %p4011_p6 = pnand %p4009_p5, %p4006_p4 }
  0x4e   :  { %4014 = shalt.err (!%p4011_p6)
}
  0x4f   :  { %s4015_s26 = scalar_lea.vmem %s47_s27, 256  ;;  %p4020_p8 = scmp.lt.s32.totalorder %s47_s27, %s47_s27 }
  0x50   :  { %p4016_p7 = scmp.ne.s32.totalorder %s47_s27, %s4015_s26  ;;  %p4021_p9 = scmp.lt.s32.totalorder %s4015_s26, %s4015_s26 }
  0x52   :  { %p4022_p10 = por %p4021_p9, %p4020_p8 }
  0x54   :  { %p4023_p11 = pnand %p4022_p10, %p4016_p7 }
  0x56   :  { %4026 = shalt.err (!%p4023_p11)
}
  0x57   :  { %52 = dma.hbm_to_vmem [thread:$0]  %s4809_s2, 256, %s47_s27, [#allocation8], %s4128_s15, %s4128_s15, %s4129_s16  }
  0x58   :  { %s4136_s29 = smov [#allocation12]   ;;  %s4137_s1 = smov [#allocation15]  }
  0x59   :  { %s70_s30 = sshll.u32 %s4136_s29, 4  ;;  %s95_s28 = sshll.u32 %s4137_s1, 4  ;;  %s71_s30 = int_to_ptr.vmem [resolvable:$true] %s70_s30  ;;  %s96_s28 = int_to_ptr.vmem [resolvable:$true] %s95_s28 }
  0x5a   :  { %s4027_s11 = scalar_lea.hbm %s4811_s4, 256 }
  0x5b   :  { %p4028_p12 = scmp.ne.s32.totalorder %s4811_s4, %s4027_s11  ;;  %p4031_p13 = scmp.lt.u32.totalorder %s4027_s11, %s4811_s4 }
  0x5d   :  { %p4033_p0 = pnand %p4031_p13, %p4028_p12 }
  0x5f   :  { %4036 = shalt.err (!%p4033_p0)
}
  0x60   :  { %s4037_s2 = scalar_lea.vmem %s71_s30, 256  ;;  %p4042_p2 = scmp.lt.s32.totalorder %s71_s30, %s71_s30 }
  0x61   :  { %p4038_p1 = scmp.ne.s32.totalorder %s71_s30, %s4037_s2  ;;  %p4043_p3 = scmp.lt.s32.totalorder %s4037_s2, %s4037_s2 }
  0x63   :  { %p4044_p4 = por %p4043_p3, %p4042_p2 }
  0x65   :  { %p4045_p5 = pnand %p4044_p4, %p4038_p1 }
  0x67   :  { %4048 = shalt.err (!%p4045_p5)
}
  0x68   :  { %76 = dma.hbm_to_vmem [thread:$0]  %s4811_s4, 256, %s71_s30, [#allocation11], %s4128_s15, %s4128_s15, %s4129_s16  }
  0x69   :  { %s4049_s19 = scalar_lea.hbm %s4813_s6, 64 }
  0x6a   :  { %p4050_p6 = scmp.ne.s32.totalorder %s4813_s6, %s4049_s19  ;;  %p4053_p7 = scmp.lt.u32.totalorder %s4049_s19, %s4813_s6 }
  0x6c   :  { %p4055_p8 = pnand %p4053_p7, %p4050_p6 }
  0x6e   :  { %4058 = shalt.err (!%p4055_p8)
}
  0x6f   :  { %s4059_s0 = scalar_lea.vmem %s96_s28, 64  ;;  %p4064_p10 = scmp.lt.s32.totalorder %s96_s28, %s96_s28 }
  0x70   :  { %p4060_p9 = scmp.ne.s32.totalorder %s96_s28, %s4059_s0  ;;  %p4065_p11 = scmp.lt.s32.totalorder %s4059_s0, %s4059_s0 }
  0x72   :  { %p4066_p12 = por %p4065_p11, %p4064_p10 }
  0x74   :  { %p4067_p13 = pnand %p4066_p12, %p4060_p9 }
  0x76   :  { %4070 = shalt.err (!%p4067_p13)
}
  0x77   :  { %98 = dma.hbm_to_vmem [thread:$0]  %s4813_s6, 64, %s96_s28, [#allocation14]  }
  0x78   :  { %s4138_s29 = smov [#allocation16]   ;;  %s4071_s10 = scalar_lea.hbm %s4814_s7, 8192 }
  0x79   :  { %s104_s30 = sshll.u32 %s4138_s29, 4  ;;  %p4072_p0 = scmp.ne.s32.totalorder %s4814_s7, %s4071_s10  ;;  %s105_s30 = int_to_ptr.vmem [resolvable:$true] %s104_s30 }
  0x7a   :  { %p4075_p1 = scmp.lt.u32.totalorder %s4071_s10, %s4814_s7 }
  0x7c   :  { %p4077_p2 = pnand %p4075_p1, %p4072_p0 }
  0x7e   :  { %4080 = shalt.err (!%p4077_p2)
}
  0x7f   :  { %s4081_s13 = scalar_lea.vmem %s105_s30, 8192  ;;  %p4086_p4 = scmp.lt.s32.totalorder %s105_s30, %s105_s30 }
  0x80   :  { %p4082_p3 = scmp.ne.s32.totalorder %s105_s30, %s4081_s13  ;;  %p4087_p5 = scmp.lt.s32.totalorder %s4081_s13, %s4081_s13 }
  0x82   :  { %p4088_p6 = por %p4087_p5, %p4086_p4 }
  0x84   :  { %p4089_p7 = pnand %p4088_p6, %p4082_p3 }
  0x86   :  { %4092 = shalt.err (!%p4089_p7)
}
  0x87   :  { %110 = dma.hbm_to_vmem [thread:$0]  %s4814_s7, 8192, %s105_s30, [#allocation17], %s4132_s3, %s4132_s3, %s4133_s20  }
  0x88   :  { %4115 = dma.done.wait [#allocation5], 16  }
  0x89   :  { %4116 = vsyncadd [#allocation5], 4294967280 }
  0x8a   :  { %4117 = dma.done.wait [#allocation8], 512  }
  0x8b   :  { %4118 = vsyncadd [#allocation8], 4294966784 }
  0x8c   :  { %4119 = dma.done.wait [#allocation11], 512  }
  0x8d   :  { %4120 = vsyncadd [#allocation11], 4294966784 }
  0x8e   :  { %4121 = dma.done.wait [#allocation14], 8256  }
  0x8f   :  { %4122 = vsyncadd [#allocation14], 4294959040 }
  0x90   :  { %4123 = dma.done.wait [#allocation17], 8192  }
  0x91   :  { %4124 = vsyncadd [#allocation17], 4294959104  ;;  %v205_v0 = vld [vmem:[#allocation13 + $0x8] sm:$0xff]  ;;  %v203_v9 = vld [vmem:[#allocation9] sm:$0xff]  ;;  %v487_v60 = vlaneseq  ;;  %s4140_s7 = smov [#allocation18]  }
  0x92   :  { %v206_v1 = vld [vmem:[#allocation13 + $0x28] sm:$0xff]  ;;  %2767 = vmatprep.mubr.f32.mxu0 %v203_v9  ;;  %v204_v30 = vld [vmem:[#allocation9 + $0x8] sm:$0xff]  ;;  %v2374_v50 = vld [vmem:[#allocation15 + $0x1] ss:$0 sm:$0xff]  ;;  %s2358_s3 = sshll.u32 %s4140_s7, 4  ;;  %s2359_s3 = int_to_ptr.vmem [resolvable:$true] %s2358_s3 }
  0x93   :  { %v207_v2 = vld [vmem:[#allocation13 + $0x48] sm:$0xff]  ;;  %v3351_v3 = vpack.c.bf16 %v206_v1, %v205_v0  ;;  %v2376_v53 = vld [vmem:[#allocation4] ss:$0 sm:$0xff]  ;;  %v488_v63 = vshrl.u32 %v487_v60, 7  ;;  %s4093_s20 = scalar_lea.vmem %s2359_s3, 256  ;;  %p4098_p9 = scmp.lt.s32.totalorder %s2359_s3, %s2359_s3 }
  0x94   :  { %v208_v4 = vld [vmem:[#allocation13 + $0x68] sm:$0xff]  ;;  %p4094_p8 = scmp.ne.s32.totalorder %s2359_s3, %s4093_s20  ;;  %p4099_p10 = scmp.lt.s32.totalorder %s4093_s20, %s4093_s20 }
  0x95   :  { %v3355_v5 = vpack.c.bf16 %v208_v4, %v207_v2  ;;  %v209_v6 = vld [vmem:[#allocation13 + $0x88] sm:$0xff]  ;;  %3352 = vmatprep.subr.bf16.mxu0 %v3351_v3  ;;  %v489_v2 = vadd.s32 8, %v488_v63 }
  0x96   :  { %v210_v7 = vld [vmem:[#allocation13 + $0xa8] sm:$0xff]  ;;  %3354 = vmatpush3.bf16.msra.mxu0 %v3351_v3  ;;  %p4100_p11 = por %p4099_p10, %p4098_p9 }
  0x97   :  { %3356 = vmatprep.subr.bf16.mxu0 %v3355_v5  ;;  %v3359_v8 = vpack.c.bf16 %v210_v7, %v209_v6  ;;  %v211_v10 = vld [vmem:[#allocation13 + $0xc8] sm:$0xff]  ;;  %v4390_v6 = vcvt.s32.f32 %v489_v2 }
  0x98   :  { %v212_v11 = vld [vmem:[#allocation13 + $0xe8] sm:$0xff]  ;;  %p4101_p12 = pnand %p4100_p11, %p4094_p8 }
  0x99   :  { %v3363_v12 = vpack.c.bf16 %v212_v11, %v211_v10  ;;  %v213_v13 = vld [vmem:[#allocation13 + $0x108] sm:$0xff] }
  0x9a   :  { %3358 = vmatpush3.bf16.msra.mxu0 %v3355_v5  ;;  %v214_v14 = vld [vmem:[#allocation13 + $0x128] sm:$0xff]  ;;  %v4388_v5 = vcvt.s32.f32 %v488_v63  ;;  %v307_v63 = vld [vmem:[#allocation13 + $0x50] sm:$0xff] }
  0x9b   :  { %3360 = vmatprep.subr.bf16.mxu0 %v3359_v8  ;;  %v3367_v15 = vpack.c.bf16 %v214_v14, %v213_v13  ;;  %v215_v16 = vld [vmem:[#allocation13 + $0x148] sm:$0xff] }
  0x9c   :  { %v216_v17 = vld [vmem:[#allocation13 + $0x168] sm:$0xff] }
  0x9d   :  { %v3371_v18 = vpack.c.bf16 %v216_v17, %v215_v16  ;;  %v217_v19 = vld [vmem:[#allocation13 + $0x188] sm:$0xff] }
  0x9e   :  { %3362 = vmatpush3.bf16.msra.mxu0 %v3359_v8  ;;  %v218_v20 = vld [vmem:[#allocation13 + $0x1a8] sm:$0xff] }
  0x9f   :  { %3364 = vmatprep.subr.bf16.mxu0 %v3363_v12  ;;  %v3375_v21 = vpack.c.bf16 %v218_v20, %v217_v19  ;;  %v219_v22 = vld [vmem:[#allocation13 + $0x1c8] sm:$0xff] }
  0xa0   :  { %v220_v23 = vld [vmem:[#allocation13 + $0x1e8] sm:$0xff] }
  0xa1   :  { %v3379_v24 = vpack.c.bf16 %v220_v23, %v219_v22  ;;  %v4300_v25 = vld [vmem:[#allocation16] sm:$0xff] }
  0xa2   :  { %3366 = vmatpush3.bf16.msra.mxu0 %v3363_v12  ;;  %v4302_v26 = vld [vmem:[#allocation16 + $0x20] sm:$0xff]  ;;  %v493_v12 = vand.u32 127, %v487_v60 }
  0xa3   :  { %3368 = vmatprep.subr.bf16.mxu0 %v3367_v15  ;;  %v4306_v27 = vpack.c.bf16 %v4302_v26, %v4300_v25  ;;  %v4308_v28 = vld [vmem:[#allocation16 + $0x40] sm:$0xff] }
  0xa4   :  { %v4310_v29 = vld [vmem:[#allocation16 + $0x60] sm:$0xff] }
  0xa5   :  { %v4315_v31 = vpack.c.bf16 %v4310_v29, %v4308_v28  ;;  %v4317_v32 = vld [vmem:[#allocation16 + $0x80] sm:$0xff] }
  0xa6   :  { %3370 = vmatpush3.bf16.msra.mxu0 %v3367_v15  ;;  %v4319_v33 = vld [vmem:[#allocation16 + $0xa0] sm:$0xff]  ;;  %v4394_v15 = vand.u32 7, %v493_v12  ;;  %v311_v12 = vld [vmem:[#allocation13 + $0xd0] sm:$0xff] }
  0xa7   :  { %3372 = vmatprep.subr.bf16.mxu0 %v3371_v18  ;;  %v4325_v34 = vpack.c.bf16 %v4319_v33, %v4317_v32  ;;  %v4327_v35 = vld [vmem:[#allocation16 + $0xc0] sm:$0xff] }
  0xa8   :  { %v4329_v36 = vld [vmem:[#allocation16 + $0xe0] sm:$0xff]  ;;  %vm515_vm2 = vcmp.eq.s32.totalorder %v4394_v15, 0  ;;  %vm546_vm9 = vcmp.eq.s32.totalorder %v4394_v15, 1 }
  0xa9   :  { %v4335_v37 = vpack.c.bf16 %v4329_v36, %v4327_v35  ;;  %v4337_v38 = vld [vmem:[#allocation16 + $0x100] sm:$0xff] }
  0xaa   :  { %3374 = vmatpush3.bf16.msra.mxu0 %v3371_v18  ;;  %v4339_v39 = vld [vmem:[#allocation16 + $0x120] sm:$0xff] }
  0xab   :  { %3376 = vmatprep.subr.bf16.mxu0 %v3375_v21  ;;  %v4345_v40 = vpack.c.bf16 %v4339_v39, %v4337_v38  ;;  %v4347_v41 = vld [vmem:[#allocation16 + $0x140] sm:$0xff] }
  0xac   :  { %v4349_v42 = vld [vmem:[#allocation16 + $0x160] sm:$0xff] }
  0xad   :  { %v4355_v43 = vpack.c.bf16 %v4349_v42, %v4347_v41  ;;  %v4357_v44 = vld [vmem:[#allocation16 + $0x180] sm:$0xff] }
  0xae   :  { %3378 = vmatpush3.bf16.msra.mxu0 %v3375_v21  ;;  %v4359_v45 = vld [vmem:[#allocation16 + $0x1a0] sm:$0xff] }
  0xaf   :  { %3380 = vmatprep.subr.bf16.mxu0 %v3379_v24  ;;  %v4365_v46 = vpack.c.bf16 %v4359_v45, %v4357_v44  ;;  %v4370_v47 = vld [vmem:[#allocation16 + $0x1c0] sm:$0xff] }
  0xb0   :  { %v4372_v48 = vld [vmem:[#allocation16 + $0x1e0] sm:$0xff] }
  0xb1   :  { %v4376_v49 = vpack.c.bf16 %v4372_v48, %v4370_v47 }
  0xb2   :  { %3382 = vmatpush3.bf16.msra.mxu0 %v3379_v24 }
  0xb3   :  { %3416 = vmatprep.subr.bf16.mxu0 %v4306_v27 }
  0xb5   :  { %2768 = vmatmul.mubr.f32.vlgmr.msra.gmra.mrb[0].mxu0 %v204_v30 }
  0xb6   :  { %3418 = vmatpush3.bf16.msra.mxu0 %v4306_v27 }
  0xb7   :  { %3420 = vmatprep.subr.bf16.mxu0 %v4315_v31 }
  0xba   :  { %3422 = vmatpush3.bf16.msra.mxu0 %v4315_v31 }
  0xbb   :  { %3424 = vmatprep.subr.bf16.mxu0 %v4325_v34 }
  0xbe   :  { %3426 = vmatpush3.bf16.msra.mxu0 %v4325_v34 }
  0xbf   :  { %3428 = vmatprep.subr.bf16.mxu0 %v4335_v37 }
  0xc2   :  { %3430 = vmatpush3.bf16.msra.mxu0 %v4335_v37 }
  0xc3   :  { %3432 = vmatprep.subr.bf16.mxu0 %v4345_v40 }
  0xc6   :  { %3434 = vmatpush3.bf16.msra.mxu0 %v4345_v40 }
  0xc7   :  { %3436 = vmatprep.subr.bf16.mxu0 %v4355_v43 }
  0xca   :  { %3438 = vmatpush3.bf16.msra.mxu0 %v4355_v43 }
  0xcb   :  { %3440 = vmatprep.subr.bf16.mxu0 %v4365_v46 }
  0xce   :  { %3442 = vmatpush3.bf16.msra.mxu0 %v4365_v46 }
  0xcf   :  { %3444 = vmatprep.subr.bf16.mxu0 %v4376_v49 }
  0xd2   :  { %3446 = vmatpush3.bf16.msra.mxu0 %v4376_v49 }
 0x188   :  { %v2769_v51 = vpop.f32.mrb[0].mxu0 }
 0x189   :  { %v4380_v52 = vadd.f32 %v2769_v51, %v2374_v50  ;;  %v294_v54 = vpop.f32.mrb[1].mxu0 }
 0x18a   :  { %v4382_v55 = vadd.f32 %v2374_v50, %v294_v54 }
 0x18b   :  { %v411_v57 = vmul.f32 %v2376_v53, %v4380_v52 }
 0x18c   :  { %741 = vxpose.xlu0.b32.start [1/2] (short) %v4382_v55, 128  ;;  %v410_v56 = vmul.f32 %v2376_v53, %v4382_v55 }
 0x18e   :  { %2837 = vmatprep.mubr.f32.mxu0 %v410_v56 }
 0x18f   :  { %2838 = vmatmul.mubr.f32.vlgmr.msra.gmra.mrb[2].mxu0 %v411_v57 }
 0x190   :  { %742 = vxpose.xlu0.b32.end [2/2] (short) %v4380_v52, 128 }
 0x262   :  { %v2839_v58 = vpop.f32.mrb[2].mxu0 }
 0x263   :  { %v478_v59 = vpop.f32.mrb[3].mxu0 }
 0x264   :  { %v495_v61 = vmax.f32 %v478_v59, %v2839_v58 }
 0x266   :  { %v496_v62 = vrot.slane %v495_v61, 4 }
 0x268   :  { %v497_v0 = vmax.f32 %v495_v61, %v496_v62  ;;  %v305_v61 = vld [vmem:[#allocation13 + $0x10] sm:$0xff] }
 0x269   :  { %v306_v62 = vld [vmem:[#allocation13 + $0x30] sm:$0xff] }
 0x26a   :  { %v498_v1 = vrot.slane %v497_v0, 2 }
 0x26c   :  { %v499_v3 = vmax.f32 %v497_v0, %v498_v1  ;;  %v3383_v0 = vpack.c.bf16 %v306_v62, %v305_v61  ;;  %v308_v1 = vld [vmem:[#allocation13 + $0x70] sm:$0xff] }
 0x26e   :  { %v500_v4 = vrot.slane %v499_v3, 1  ;;  %3384 = vmatprep.subr.bf16.mxu1 %v3383_v0 }
 0x26f   :  { %3386 = vmatpush3.bf16.msra.mxu1 %v3383_v0  ;;  %v318_v0 = vld [vmem:[#allocation13 + $0x1b0] sm:$0xff] }
 0x270   :  { %v501_v7 = vmax.f32 %v499_v3, %v500_v4  ;;  %v3387_v3 = vpack.c.bf16 %v308_v1, %v307_v63  ;;  %v309_v4 = vld [vmem:[#allocation13 + $0x90] sm:$0xff] }
 0x271   :  { %v317_v63 = vld [vmem:[#allocation13 + $0x190] sm:$0xff] }
 0x272   :  { %vm502_vm0 = vcmp.eq.f32.partialorder %v478_v59, %v501_v7  ;;  %vm503_vm1 = vcmp.eq.f32.partialorder %v2839_v58, %v501_v7  ;;  %v310_v7 = vld [vmem:[#allocation13 + $0xb0] sm:$0xff]  ;;  %3388 = vmatprep.subr.bf16.mxu1 %v3387_v3  ;;  %v3407_v22 = vpack.c.bf16 %v318_v0, %v317_v63 }
 0x273   :  { %v504_v8 = vsel %vm502_vm0, %v4388_v5, 16.0  ;;  %v505_v9 = vsel %vm503_vm1, %v4390_v6, 16.0  ;;  %3390 = vmatpush3.bf16.msra.mxu1 %v3387_v3  ;;  %v319_v3 = vld [vmem:[#allocation13 + $0x1d0] sm:$0xff]  ;;  %vm773_vm0 = vcmask 130048   ;;  %vm577_vm1 = vcmp.eq.s32.totalorder %v4394_v15, 2 }
 0x274   :  { %v506_v10 = vmin.f32 %v504_v8, %v505_v9  ;;  %v3391_v9 = vpack.c.bf16 %v310_v7, %v309_v4  ;;  %v320_v4 = vld [vmem:[#allocation13 + $0x1f0] sm:$0xff] }
 0x276   :  { %v507_v11 = vrot.slane %v506_v10, 4  ;;  %3392 = vmatprep.subr.bf16.mxu1 %v3391_v9 }
 0x277   :  { %3394 = vmatpush3.bf16.msra.mxu1 %v3391_v9 }
 0x278   :  { %v508_v13 = vmin.f32 %v506_v10, %v507_v11  ;;  %v303_v10 = vld [vmem:[#allocation10] sm:$0xff] }
 0x279   :  { %2802 = vmatprep.mubr.f32.mxu1 %v303_v10 }
 0x27a   :  { %v509_v14 = vrot.slane %v508_v13, 2 }
 0x27c   :  { %v510_v16 = vmin.f32 %v508_v13, %v509_v14  ;;  %v312_v13 = vld [vmem:[#allocation13 + $0xf0] sm:$0xff] }
 0x27e   :  { %v511_v17 = vrot.slane %v510_v16, 1 }
 0x280   :  { %v512_v18 = vmin.f32 %v510_v16, %v511_v17  ;;  %v3395_v16 = vpack.c.bf16 %v312_v13, %v311_v12  ;;  %v313_v17 = vld [vmem:[#allocation13 + $0x110] sm:$0xff] }
 0x282   :  { %vm513_vm3 = vcmp.eq.f32.partialorder %v4388_v5, %v512_v18  ;;  %vm514_vm4 = vcmp.eq.f32.partialorder %v4390_v6, %v512_v18  ;;  %v314_v18 = vld [vmem:[#allocation13 + $0x130] sm:$0xff]  ;;  %3396 = vmatprep.subr.bf16.mxu1 %v3395_v16 }
 0x283   :  { %vm4399_vm5 = vmand %vm513_vm3, %vm515_vm2  ;;  %v524_v20 = vsel %vm513_vm3, -1e+30, %v478_v59  ;;  %v525_v21 = vsel %vm514_vm4, -1e+30, %v2839_v58  ;;  %3398 = vmatpush3.bf16.msra.mxu1 %v3395_v16  ;;  %v757_v16 = vpop.trf.xlu0 }
 0x284   :  { %vm4403_vm6 = vmand %vm514_vm4, %vm515_vm2  ;;  %v526_v23 = vmax.f32 %v524_v20, %v525_v21 }
 0x286   :  { %v527_v24 = vrot.slane %v526_v23, 4 }
 0x288   :  { %v528_v30 = vmax.f32 %v526_v23, %v527_v24 }
 0x28a   :  { %v529_v50 = vrot.slane %v528_v30, 2 }
 0x28c   :  { %v530_v51 = vmax.f32 %v528_v30, %v529_v50  ;;  %v4139_v30 = vmov 0.0  }
 0x28d   :  { %v520_v50 = vsel %vm4399_vm5, 1.0, %v4139_v30 }
 0x28e   :  { %v531_v53 = vrot.slane %v530_v51, 1 }
 0x290   :  { %v532_v54 = vmax.f32 %v530_v51, %v531_v53 }
 0x292   :  { %vm533_vm7 = vcmp.eq.f32.partialorder %v524_v20, %v532_v54  ;;  %vm534_vm8 = vcmp.eq.f32.partialorder %v525_v21, %v532_v54  ;;  %v521_v54 = vsel %vm4403_vm6, 1.0, %v4139_v30 }
 0x293   :  { %v535_v56 = vsel %vm533_vm7, %v4388_v5, 16.0  ;;  %v536_v57 = vsel %vm534_vm8, %v4390_v6, 16.0  ;;  %vm608_vm8 = vcmp.eq.s32.totalorder %v4394_v15, 3 }
 0x294   :  { %v537_v60 = vmin.f32 %v535_v56, %v536_v57 }
 0x296   :  { %v538_v59 = vrot.slane %v537_v60, 4 }
 0x298   :  { %v539_v58 = vmin.f32 %v537_v60, %v538_v59  ;;  %v315_v59 = vld [vmem:[#allocation13 + $0x150] sm:$0xff] }
 0x29a   :  { %v540_v2 = vrot.slane %v539_v58, 2 }
 0x29c   :  { %v541_v8 = vmin.f32 %v539_v58, %v540_v2  ;;  %v316_v58 = vld [vmem:[#allocation13 + $0x170] sm:$0xff] }
 0x29d   :  { %v3403_v61 = vpack.c.bf16 %v316_v58, %v315_v59 }
 0x29e   :  { %v542_v11 = vrot.slane %v541_v8, 1 }
 0x2a0   :  { %v543_v14 = vmin.f32 %v541_v8, %v542_v11  ;;  %v3411_v8 = vpack.c.bf16 %v320_v4, %v319_v3 }
 0x2a2   :  { %vm544_vm10 = vcmp.eq.f32.partialorder %v4388_v5, %v543_v14  ;;  %vm545_vm11 = vcmp.eq.f32.partialorder %v4390_v6, %v543_v14  ;;  %v304_v14 = vld [vmem:[#allocation10 + $0x8] sm:$0xff] }
 0x2a3   :  { %vm549_vm12 = vmand %vm544_vm10, %vm546_vm9  ;;  %v555_v23 = vsel %vm544_vm10, -1e+30, %v524_v20  ;;  %v556_v24 = vsel %vm545_vm11, -1e+30, %v525_v21  ;;  %v3399_v20 = vpack.c.bf16 %v314_v18, %v313_v17 }
 0x2a4   :  { %vm550_vm13 = vmand %vm545_vm11, %vm546_vm9  ;;  %v551_v51 = vsel %vm549_vm12, 1.0, %v4139_v30  ;;  %v557_v53 = vmax.f32 %v555_v23, %v556_v24 }
 0x2a5   :  { %v552_v56 = vsel %vm550_vm13, 1.0, %v4139_v30  ;;  %v553_v57 = vadd.f32 %v551_v51, %v520_v50  ;;  %3400 = vmatprep.subr.bf16.mxu1 %v3399_v20 }
 0x2a6   :  { %v554_v21 = vadd.f32 %v552_v56, %v521_v54  ;;  %v558_v60 = vrot.slane %v557_v53, 4  ;;  %3402 = vmatpush3.bf16.msra.mxu1 %v3399_v20 }
 0x2a7   :  { %3404 = vmatprep.subr.bf16.mxu1 %v3403_v61 }
 0x2a8   :  { %v559_v19 = vmax.f32 %v557_v53, %v558_v60 }
 0x2aa   :  { %v560_v62 = vrot.slane %v559_v19, 2  ;;  %3406 = vmatpush3.bf16.msra.mxu1 %v3403_v61 }
 0x2ab   :  { %3408 = vmatprep.subr.bf16.mxu1 %v3407_v22 }
 0x2ac   :  { %v561_v1 = vmax.f32 %v559_v19, %v560_v62 }
 0x2ae   :  { %v562_v2 = vrot.slane %v561_v1, 1  ;;  %3410 = vmatpush3.bf16.msra.mxu1 %v3407_v22 }
 0x2af   :  { %3412 = vmatprep.subr.bf16.mxu1 %v3411_v8 }
 0x2b0   :  { %v563_v7 = vmax.f32 %v561_v1, %v562_v2 }
 0x2b2   :  { %vm564_vm14 = vcmp.eq.f32.partialorder %v555_v23, %v563_v7  ;;  %vm565_vm15 = vcmp.eq.f32.partialorder %v556_v24, %v563_v7  ;;  %3414 = vmatpush3.bf16.msra.mxu1 %v3411_v8 }
 0x2b3   :  { %v566_v9 = vsel %vm564_vm14, %v4388_v5, 16.0  ;;  %v567_v10 = vsel %vm565_vm15, %v4390_v6, 16.0  ;;  %vm639_vm15 = vcmp.eq.s32.totalorder %v4394_v15, 4 }
 0x2b4   :  { %v568_v11 = vmin.f32 %v566_v9, %v567_v10 }
 0x2b5   :  { %2803 = vmatmul.mubr.f32.vlgmr.msra.gmra.mrb[0].mxu1 %v304_v14 }
 0x2b6   :  { %v569_v12 = vrot.slane %v568_v11, 4  ;;  %2844 = vmatprep.mubr.msk.f32.mxu1 %vm773_vm0, %v757_v16 }
 0x2b8   :  { %v570_v13 = vmin.f32 %v568_v11, %v569_v12 }
 0x2ba   :  { %v571_v17 = vrot.slane %v570_v13, 2 }
 0x2bc   :  { %v572_v18 = vmin.f32 %v570_v13, %v571_v17 }
 0x2be   :  { %v573_v50 = vrot.slane %v572_v18, 1 }
 0x2c0   :  { %v574_v51 = vmin.f32 %v572_v18, %v573_v50 }
 0x2c2   :  { %vm575_vm2 = vcmp.eq.f32.partialorder %v4388_v5, %v574_v51  ;;  %vm576_vm3 = vcmp.eq.f32.partialorder %v4390_v6, %v574_v51 }
 0x2c3   :  { %vm580_vm4 = vmand %vm575_vm2, %vm577_vm1  ;;  %v586_v53 = vsel %vm575_vm2, -1e+30, %v555_v23  ;;  %v587_v54 = vsel %vm576_vm3, -1e+30, %v556_v24 }
 0x2c4   :  { %vm581_vm5 = vmand %vm576_vm3, %vm577_vm1  ;;  %v582_v56 = vsel %vm580_vm4, 1.0, %v4139_v30  ;;  %v588_v20 = vmax.f32 %v586_v53, %v587_v54 }
 0x2c5   :  { %v583_v60 = vsel %vm581_vm5, 1.0, %v4139_v30  ;;  %v584_v59 = vadd.f32 %v582_v56, %v553_v57 }
 0x2c6   :  { %v585_v58 = vadd.f32 %v583_v60, %v554_v21  ;;  %v589_v19 = vrot.slane %v588_v20, 4 }
 0x2c8   :  { %v590_v61 = vmax.f32 %v588_v20, %v589_v19 }
 0x2ca   :  { %v591_v62 = vrot.slane %v590_v61, 2 }
 0x2cc   :  { %v592_v63 = vmax.f32 %v590_v61, %v591_v62 }
 0x2ce   :  { %v593_v0 = vrot.slane %v592_v63, 1 }
 0x2d0   :  { %v594_v1 = vmax.f32 %v592_v63, %v593_v0 }
 0x2d2   :  { %vm595_vm6 = vcmp.eq.f32.partialorder %v586_v53, %v594_v1  ;;  %vm596_vm7 = vcmp.eq.f32.partialorder %v587_v54, %v594_v1 }
 0x2d3   :  { %v597_v22 = vsel %vm595_vm6, %v4388_v5, 16.0  ;;  %v598_v23 = vsel %vm596_vm7, %v4390_v6, 16.0  ;;  %vm670_vm7 = vcmp.eq.s32.totalorder %v4394_v15, 5 }
 0x2d4   :  { %v599_v24 = vmin.f32 %v597_v22, %v598_v23 }
 0x2d6   :  { %v600_v2 = vrot.slane %v599_v24, 4 }
 0x2d8   :  { %v601_v3 = vmin.f32 %v599_v24, %v600_v2 }
 0x2da   :  { %v602_v4 = vrot.slane %v601_v3, 2 }
 0x2dc   :  { %v603_v7 = vmin.f32 %v601_v3, %v602_v4 }
 0x2de   :  { %v604_v8 = vrot.slane %v603_v7, 1 }
 0x2e0   :  { %v605_v57 = vmin.f32 %v603_v7, %v604_v8 }
 0x2e2   :  { %vm606_vm9 = vcmp.eq.f32.partialorder %v4388_v5, %v605_v57  ;;  %vm607_vm10 = vcmp.eq.f32.partialorder %v4390_v6, %v605_v57 }
 0x2e3   :  { %vm611_vm11 = vmand %vm606_vm9, %vm608_vm8  ;;  %v617_v21 = vsel %vm606_vm9, -1e+30, %v586_v53  ;;  %v618_v9 = vsel %vm607_vm10, -1e+30, %v587_v54 }
 0x2e4   :  { %vm612_vm12 = vmand %vm607_vm10, %vm608_vm8  ;;  %v613_v10 = vsel %vm611_vm11, 1.0, %v4139_v30  ;;  %v619_v11 = vmax.f32 %v617_v21, %v618_v9 }
 0x2e5   :  { %v614_v12 = vsel %vm612_vm12, 1.0, %v4139_v30  ;;  %v615_v13 = vadd.f32 %v613_v10, %v584_v59 }
 0x2e6   :  { %v616_v14 = vadd.f32 %v614_v12, %v585_v58  ;;  %v620_v16 = vrot.slane %v619_v11, 4 }
 0x2e8   :  { %v621_v17 = vmax.f32 %v619_v11, %v620_v16 }
 0x2ea   :  { %v622_v18 = vrot.slane %v621_v17, 2 }
 0x2ec   :  { %v623_v50 = vmax.f32 %v621_v17, %v622_v18 }
 0x2ee   :  { %v624_v51 = vrot.slane %v623_v50, 1 }
 0x2f0   :  { %v625_v56 = vmax.f32 %v623_v50, %v624_v51 }
 0x2f2   :  { %vm626_vm13 = vcmp.eq.f32.partialorder %v617_v21, %v625_v56  ;;  %vm627_vm14 = vcmp.eq.f32.partialorder %v618_v9, %v625_v56 }
 0x2f3   :  { %v628_v20 = vsel %vm626_vm13, %v4388_v5, 16.0  ;;  %v629_v53 = vsel %vm627_vm14, %v4390_v6, 16.0  ;;  %vm701_vm14 = vcmp.eq.s32.totalorder %v4394_v15, 6 }
 0x2f4   :  { %v630_v54 = vmin.f32 %v628_v20, %v629_v53 }
 0x2f6   :  { %v631_v60 = vrot.slane %v630_v54, 4 }
 0x2f8   :  { %v632_v19 = vmin.f32 %v630_v54, %v631_v60 }
 0x2fa   :  { %v633_v61 = vrot.slane %v632_v19, 2 }
 0x2fc   :  { %v634_v62 = vmin.f32 %v632_v19, %v633_v61 }
 0x2fe   :  { %v635_v63 = vrot.slane %v634_v62, 1 }
 0x300   :  { %v636_v59 = vmin.f32 %v634_v62, %v635_v63 }
 0x302   :  { %vm637_vm1 = vcmp.eq.f32.partialorder %v4388_v5, %v636_v59  ;;  %vm638_vm2 = vcmp.eq.f32.partialorder %v4390_v6, %v636_v59 }
 0x303   :  { %v648_v58 = vsel %vm637_vm1, -1e+30, %v617_v21  ;;  %v649_v0 = vsel %vm638_vm2, -1e+30, %v618_v9  ;;  %vm642_vm3 = vmand %vm637_vm1, %vm639_vm15 }
 0x304   :  { %v650_v1 = vmax.f32 %v648_v58, %v649_v0  ;;  %vm643_vm4 = vmand %vm638_vm2, %vm639_vm15  ;;  %v644_v22 = vsel %vm642_vm3, 1.0, %v4139_v30 }
 0x305   :  { %v645_v23 = vsel %vm643_vm4, 1.0, %v4139_v30  ;;  %v646_v24 = vadd.f32 %v644_v22, %v615_v13  ;;  %v758_v22 = vpop.trf.xlu0 }
 0x306   :  { %v651_v2 = vrot.slane %v650_v1, 4  ;;  %v647_v3 = vadd.f32 %v645_v23, %v616_v14 }
 0x308   :  { %v652_v4 = vmax.f32 %v650_v1, %v651_v2 }
 0x30a   :  { %v653_v7 = vrot.slane %v652_v4, 2 }
 0x30c   :  { %v654_v8 = vmax.f32 %v652_v4, %v653_v7  ;;  %v759_v7 = vpop.trf.xlu0 }
 0x30e   :  { %v655_v57 = vrot.slane %v654_v8, 1 }
 0x310   :  { %v656_v10 = vmax.f32 %v654_v8, %v655_v57  ;;  %v760_v57 = vpop.trf.xlu0 }
 0x312   :  { %vm657_vm5 = vcmp.eq.f32.partialorder %v648_v58, %v656_v10  ;;  %vm658_vm6 = vcmp.eq.f32.partialorder %v649_v0, %v656_v10 }
 0x313   :  { %v659_v21 = vsel %vm657_vm5, %v4388_v5, 16.0  ;;  %v660_v9 = vsel %vm658_vm6, %v4390_v6, 16.0  ;;  %vm732_vm6 = vcmp.eq.s32.totalorder %v4394_v15, 7 }
 0x314   :  { %v661_v11 = vmin.f32 %v659_v21, %v660_v9 }
 0x316   :  { %v662_v12 = vrot.slane %v661_v11, 4 }
 0x318   :  { %v663_v16 = vmin.f32 %v661_v11, %v662_v12 }
 0x31a   :  { %v664_v17 = vrot.slane %v663_v16, 2 }
 0x31c   :  { %v665_v18 = vmin.f32 %v663_v16, %v664_v17  ;;  %v761_v16 = vpop.trf.xlu0 }
 0x31e   :  { %v666_v50 = vrot.slane %v665_v18, 1 }
 0x320   :  { %v667_v13 = vmin.f32 %v665_v18, %v666_v50 }
 0x322   :  { %vm668_vm8 = vcmp.eq.f32.partialorder %v4388_v5, %v667_v13  ;;  %vm669_vm9 = vcmp.eq.f32.partialorder %v4390_v6, %v667_v13 }
 0x323   :  { %vm673_vm10 = vmand %vm668_vm8, %vm670_vm7  ;;  %v679_v14 = vsel %vm668_vm8, -1e+30, %v648_v58  ;;  %v680_v51 = vsel %vm669_vm9, -1e+30, %v649_v0 }
 0x324   :  { %vm674_vm11 = vmand %vm669_vm9, %vm670_vm7  ;;  %v675_v56 = vsel %vm673_vm10, 1.0, %v4139_v30  ;;  %v681_v20 = vmax.f32 %v679_v14, %v680_v51 }
 0x325   :  { %v676_v53 = vsel %vm674_vm11, 1.0, %v4139_v30  ;;  %v677_v54 = vadd.f32 %v675_v56, %v646_v24 }
 0x326   :  { %v678_v60 = vadd.f32 %v676_v53, %v647_v3  ;;  %v682_v19 = vrot.slane %v681_v20, 4  ;;  %v762_v53 = vpop.trf.xlu0 }
 0x328   :  { %v683_v61 = vmax.f32 %v681_v20, %v682_v19 }
 0x32a   :  { %v684_v62 = vrot.slane %v683_v61, 2 }
 0x32c   :  { %v685_v63 = vmax.f32 %v683_v61, %v684_v62 }
 0x32e   :  { %v686_v59 = vrot.slane %v685_v63, 1 }
 0x330   :  { %v687_v1 = vmax.f32 %v685_v63, %v686_v59  ;;  %v763_v63 = vpop.trf.xlu0 }
 0x332   :  { %vm688_vm12 = vcmp.eq.f32.partialorder %v679_v14, %v687_v1  ;;  %vm689_vm13 = vcmp.eq.f32.partialorder %v680_v51, %v687_v1 }
 0x333   :  { %v690_v58 = vsel %vm688_vm12, %v4388_v5, 16.0  ;;  %v691_v0 = vsel %vm689_vm13, %v4390_v6, 16.0 }
 0x334   :  { %v692_v23 = vmin.f32 %v690_v58, %v691_v0  ;;  %v764_v58 = vpop.trf.xlu0 }
 0x336   :  { %v693_v2 = vrot.slane %v692_v23, 4 }
 0x338   :  { %v694_v4 = vmin.f32 %v692_v23, %v693_v2  ;;  %v765_v23 = vpop.trf.xlu0 }
 0x33a   :  { %v695_v8 = vrot.slane %v694_v4, 2 }
 0x33c   :  { %v696_v24 = vmin.f32 %v694_v4, %v695_v8  ;;  %v766_v8 = vpop.trf.xlu0 }
 0x33e   :  { %v697_v3 = vrot.slane %v696_v24, 1 }
 0x340   :  { %v698_v10 = vmin.f32 %v696_v24, %v697_v3 }
 0x342   :  { %vm699_vm15 = vcmp.eq.f32.partialorder %v4388_v5, %v698_v10  ;;  %vm700_vm1 = vcmp.eq.f32.partialorder %v4390_v6, %v698_v10 }
 0x343   :  { %vm704_vm2 = vmand %vm699_vm15, %vm701_vm14  ;;  %v710_v21 = vsel %vm699_vm15, -1e+30, %v679_v14  ;;  %v711_v9 = vsel %vm700_vm1, -1e+30, %v680_v51 }
 0x344   :  { %vm705_vm3 = vmand %vm700_vm1, %vm701_vm14  ;;  %v706_v11 = vsel %vm704_vm2, 1.0, %v4139_v30  ;;  %v712_v12 = vmax.f32 %v710_v21, %v711_v9 }
 0x345   :  { %v707_v17 = vsel %vm705_vm3, 1.0, %v4139_v30  ;;  %v708_v18 = vadd.f32 %v706_v11, %v677_v54  ;;  %v767_v11 = vpop.trf.xlu0 }
 0x346   :  { %v709_v50 = vadd.f32 %v707_v17, %v678_v60  ;;  %v713_v13 = vrot.slane %v712_v12, 4 }
 0x348   :  { %v714_v56 = vmax.f32 %v712_v12, %v713_v13  ;;  %v152_v13 = vld [vmem:[#allocation16 + $0x28] sm:$0xff] }
 0x34a   :  { %v715_v20 = vrot.slane %v714_v56, 2 }
 0x34c   :  { %v716_v19 = vmax.f32 %v714_v56, %v715_v20  ;;  %v153_v56 = vld [vmem:[#allocation16 + $0x48] sm:$0xff] }
 0x34e   :  { %v717_v61 = vrot.slane %v716_v19, 1 }
 0x350   :  { %v718_v62 = vmax.f32 %v716_v19, %v717_v61  ;;  %v155_v61 = vld [vmem:[#allocation16 + $0x88] sm:$0xff] }
 0x352   :  { %vm719_vm4 = vcmp.eq.f32.partialorder %v710_v21, %v718_v62  ;;  %vm720_vm5 = vcmp.eq.f32.partialorder %v711_v9, %v718_v62  ;;  %v156_v62 = vld [vmem:[#allocation16 + $0xa8] sm:$0xff] }
 0x353   :  { %v721_v14 = vsel %vm719_vm4, %v4388_v5, 16.0  ;;  %v722_v51 = vsel %vm720_vm5, %v4390_v6, 16.0 }
 0x354   :  { %v723_v59 = vmin.f32 %v721_v14, %v722_v51  ;;  %v158_v14 = vld [vmem:[#allocation16 + $0xe8] sm:$0xff] }
 0x356   :  { %v724_v1 = vrot.slane %v723_v59, 4 }
 0x358   :  { %v725_v0 = vmin.f32 %v723_v59, %v724_v1  ;;  %v159_v59 = vld [vmem:[#allocation16 + $0x108] sm:$0xff] }
 0x359   :  { %v160_v1 = vld [vmem:[#allocation16 + $0x128] sm:$0xff] }
 0x35a   :  { %v726_v54 = vrot.slane %v725_v0, 2 }
 0x35c   :  { %v727_v60 = vmin.f32 %v725_v0, %v726_v54  ;;  %v161_v0 = vld [vmem:[#allocation16 + $0x148] sm:$0xff] }
 0x35d   :  { %v162_v54 = vld [vmem:[#allocation16 + $0x168] sm:$0xff] }
 0x35e   :  { %v728_v2 = vrot.slane %v727_v60, 1 }
 0x360   :  { %v729_v4 = vmin.f32 %v727_v60, %v728_v2  ;;  %v4500_v60 = vpack.c.bf16 %v162_v54, %v161_v0  ;;  %v164_v2 = vld [vmem:[#allocation16 + $0x1a8] sm:$0xff] }
 0x361   :  { %v166_v0 = vld [vmem:[#allocation16 + $0x1e8] sm:$0xff] }
 0x362   :  { %vm730_vm7 = vcmp.eq.f32.partialorder %v4388_v5, %v729_v4  ;;  %vm731_vm8 = vcmp.eq.f32.partialorder %v4390_v6, %v729_v4  ;;  %v768_v5 = vpop.trf.xlu0 }
 0x363   :  { %vm735_vm9 = vmand %vm730_vm7, %vm732_vm6 }
 0x364   :  { %vm736_vm10 = vmand %vm731_vm8, %vm732_vm6  ;;  %v737_v24 = vsel %vm735_vm9, 1.0, %v4139_v30 }
 0x365   :  { %v738_v3 = vsel %vm736_vm10, 1.0, %v4139_v30  ;;  %v739_v10 = vadd.f32 %v737_v24, %v708_v18 }
 0x366   :  { %v740_v21 = vadd.f32 %v738_v3, %v709_v50  ;;  %v769_v6 = vpop.trf.xlu0  ;;  %v151_v50 = vld [vmem:[#allocation16 + $0x8] sm:$0xff] }
 0x367   :  { %v4481_v20 = vpack.c.bf16 %v152_v13, %v151_v50 }
 0x368   :  { %v3447_v9 = vpack.c.bf16 %v740_v21, %v739_v10 }
 0x369   :  { %3484 = vmatprep.subr.bf16.mxu0 %v4481_v20 }
 0x36a   :  { %3448 = vmatprep.subr.bf16.mxu1 %v3447_v9  ;;  %v770_v15 = vpop.trf.xlu0  ;;  %3486 = vmatpush3.bf16.msra.mxu0 %v4481_v20 }
 0x36b   :  { %3450 = vmatpush3.bf16.msra.mxu1 %v3447_v9 }
 0x36e   :  { %2845 = vmatmul.mubr.msk.f32.vlgmr.msra.gmra.mrb[2].mxu1 %vm773_vm0, %v758_v22  ;;  %v771_v30 = vpop.trf.xlu0 }
 0x36f   :  { %2847 = vmatprep.mubr.msk.f32.mxu1 %vm773_vm0, %v759_v7  ;;  %v2375_v7 = vld [vmem:[#allocation15 + $0x2] ss:$0 sm:$0xff] }
 0x372   :  { %2848 = vmatmul.mubr.msk.f32.gmra.mrb[4].mxu1 %vm773_vm0, %v760_v57  ;;  %v772_v22 = vpop.trf.xlu0 }
 0x373   :  { %2850 = vmatprep.mubr.msk.f32.mxu1 %vm773_vm0, %v761_v16 }
 0x376   :  { %2851 = vmatmul.mubr.msk.f32.gmra.mrb[6].mxu1 %vm773_vm0, %v762_v53  ;;  %v154_v53 = vld [vmem:[#allocation16 + $0x68] sm:$0xff] }
 0x377   :  { %2853 = vmatprep.mubr.msk.f32.mxu1 %vm773_vm0, %v763_v63  ;;  %v4483_v19 = vpack.c.bf16 %v154_v53, %v153_v56  ;;  %v157_v63 = vld [vmem:[#allocation16 + $0xc8] sm:$0xff] }
 0x378   :  { %v4492_v51 = vpack.c.bf16 %v158_v14, %v157_v63 }
 0x379   :  { %3488 = vmatprep.subr.bf16.mxu0 %v4483_v19 }
 0x37a   :  { %2854 = vmatmul.mubr.msk.f32.gmra.mrb[8].mxu1 %vm773_vm0, %v764_v58  ;;  %3490 = vmatpush3.bf16.msra.mxu0 %v4483_v19  ;;  %v4496_v58 = vpack.c.bf16 %v160_v1, %v159_v59 }
 0x37b   :  { %2856 = vmatprep.mubr.msk.f32.mxu1 %vm773_vm0, %v765_v23  ;;  %v163_v23 = vld [vmem:[#allocation16 + $0x188] sm:$0xff] }
 0x37c   :  { %v4504_v4 = vpack.c.bf16 %v164_v2, %v163_v23  ;;  %v167_v2 = vld [vmem:[#allocation16 + $0x10] sm:$0xff] }
 0x37e   :  { %2857 = vmatmul.mubr.msk.f32.gmra.mrb[10].mxu1 %vm773_vm0, %v766_v8 }
 0x37f   :  { %2859 = vmatprep.mubr.msk.f32.mxu1 %vm773_vm0, %v767_v11 }
 0x382   :  { %2860 = vmatmul.mubr.msk.f32.gmra.mrb[12].mxu1 %vm773_vm0, %v768_v5 }
 0x383   :  { %2862 = vmatprep.mubr.msk.f32.mxu1 %vm773_vm0, %v769_v6 }
 0x386   :  { %2863 = vmatmul.mubr.msk.f32.gmra.mrb[14].mxu1 %vm773_vm0, %v770_v15 }
 0x387   :  { %2865 = vmatprep.mubr.msk.f32.mxu1 %vm773_vm0, %v771_v30 }
 0x388   :  { %v2804_v57 = vpop.f32.mrb[0].mxu1 }
 0x389   :  { %v400_v12 = vadd.f32 %v2804_v57, %v2375_v7  ;;  %v394_v16 = vpop.f32.mrb[1].mxu1 }
 0x38a   :  { %2866 = vmatmul.mubr.msk.f32.gmra.mrb[16].mxu1 %vm773_vm0, %v772_v22  ;;  %v395_v17 = vadd.f32 %v2375_v7, %v394_v16 }
 0x38b   :  { %2900 = vmatprep.mubr.f32.mxu1 %v4382_v55  ;;  %v4488_v55 = vpack.c.bf16 %v156_v62, %v155_v61 }
 0x38c   :  { %v4479_v18 = vpack.c.bf16 %v400_v12, %v395_v17 }
 0x38d   :  { %3492 = vmatprep.subr.bf16.mxu0 %v4488_v55 }
 0x38e   :  { %3494 = vmatpush3.bf16.msra.mxu0 %v4488_v55 }
 0x38f   :  { %3496 = vmatprep.subr.bf16.mxu0 %v4492_v51 }
 0x392   :  { %3498 = vmatpush3.bf16.msra.mxu0 %v4492_v51 }
 0x393   :  { %3500 = vmatprep.subr.bf16.mxu0 %v4496_v58 }
 0x396   :  { %3502 = vmatpush3.bf16.msra.mxu0 %v4496_v58 }
 0x397   :  { %3504 = vmatprep.subr.bf16.mxu0 %v4500_v60 }
 0x39a   :  { %3506 = vmatpush3.bf16.msra.mxu0 %v4500_v60 }
 0x39b   :  { %3508 = vmatprep.subr.bf16.mxu0 %v4504_v4 }
 0x39e   :  { %3510 = vmatpush3.bf16.msra.mxu0 %v4504_v4 }
 0x441   :  { %v2846_v8 = vpop.f32.mrb[2].mxu1 }
 0x442   :  { %v968_v24 = vmul.f32 %v2846_v8, %v4302_v26  ;;  %v888_v3 = vpop.f32.mrb[3].mxu1  ;;  %v168_v8 = vld [vmem:[#allocation16 + $0x30] sm:$0xff] }
 0x443   :  { %v967_v10 = vmul.f32 %v888_v3, %v4300_v25  ;;  %v4565_v3 = vpack.c.bf16 %v168_v8, %v167_v2  ;;  %v194_v2 = vld [vmem:[#allocation16 + $0x178] sm:$0xff] }
 0x445   :  { %v4511_v21 = vpack.c.bf16 %v968_v24, %v967_v10  ;;  %v2849_v9 = vpop.f32.mrb[4].mxu1  ;;  %v169_v24 = vld [vmem:[#allocation16 + $0x50] sm:$0xff] }
 0x446   :  { %v970_v11 = vmul.f32 %v2849_v9, %v4310_v29  ;;  %v898_v5 = vpop.f32.mrb[5].mxu1  ;;  %v171_v9 = vld [vmem:[#allocation16 + $0x90] sm:$0xff] }
 0x447   :  { %v969_v6 = vmul.f32 %v898_v5, %v4308_v28  ;;  %3452 = vmatprep.subr.bf16.mxu1 %v4511_v21 }
 0x448   :  { %3454 = vmatpush3.bf16.msra.mxu1 %v4511_v21 }
 0x449   :  { %v4517_v15 = vpack.c.bf16 %v970_v11, %v969_v6  ;;  %v2852_v30 = vpop.f32.mrb[6].mxu1  ;;  %v172_v11 = vld [vmem:[#allocation16 + $0xb0] sm:$0xff] }
 0x44a   :  { %v972_v26 = vmul.f32 %v2852_v30, %v4319_v33  ;;  %v908_v22 = vpop.f32.mrb[7].mxu1  ;;  %v4572_v5 = vpack.c.bf16 %v172_v11, %v171_v9  ;;  %v173_v6 = vld [vmem:[#allocation16 + $0xd0] sm:$0xff]  ;;  %v197_v11 = vld [vmem:[#allocation16 + $0x1d8] sm:$0xff] }
 0x44b   :  { %v971_v25 = vmul.f32 %v908_v22, %v4317_v32  ;;  %3456 = vmatprep.subr.bf16.mxu1 %v4517_v15  ;;  %v174_v30 = vld [vmem:[#allocation16 + $0xf0] sm:$0xff] }
 0x44c   :  { %3458 = vmatpush3.bf16.msra.mxu1 %v4517_v15  ;;  %v175_v22 = vld [vmem:[#allocation16 + $0x110] sm:$0xff] }
 0x44d   :  { %v4523_v29 = vpack.c.bf16 %v972_v26, %v971_v25  ;;  %v2855_v7 = vpop.f32.mrb[8].mxu1  ;;  %v4576_v26 = vpack.c.bf16 %v174_v30, %v173_v6  ;;  %v176_v25 = vld [vmem:[#allocation16 + $0x130] sm:$0xff]  ;;  %v198_v6 = vld [vmem:[#allocation16 + $0x1f8] sm:$0xff] }
 0x44e   :  { %v974_v28 = vmul.f32 %v2855_v7, %v4329_v36  ;;  %v918_v57 = vpop.f32.mrb[9].mxu1  ;;  %v4580_v7 = vpack.c.bf16 %v176_v25, %v175_v22  ;;  %v4623_v30 = vpack.c.bf16 %v198_v6, %v197_v11  ;;  %v181_v22 = vld [vmem:[#allocation16 + $0x1d0] sm:$0xff]  ;;  %v1653_v6 = vld [vmem:[#allocation13 + $0x40] sm:$0xff] }
 0x44f   :  { %v973_v12 = vmul.f32 %v918_v57, %v4327_v35  ;;  %3460 = vmatprep.subr.bf16.mxu1 %v4523_v29  ;;  %v178_v57 = vld [vmem:[#allocation16 + $0x170] sm:$0xff] }
 0x450   :  { %3462 = vmatpush3.bf16.msra.mxu1 %v4523_v29  ;;  %v182_v25 = vld [vmem:[#allocation16 + $0x1f0] sm:$0xff] }
 0x451   :  { %v4529_v33 = vpack.c.bf16 %v974_v28, %v973_v12  ;;  %v2858_v16 = vpop.f32.mrb[10].mxu1  ;;  %v177_v28 = vld [vmem:[#allocation16 + $0x150] sm:$0xff] }
 0x452   :  { %v976_v32 = vmul.f32 %v2858_v16, %v4339_v39  ;;  %v928_v17 = vpop.f32.mrb[11].mxu1  ;;  %v4584_v12 = vpack.c.bf16 %v178_v57, %v177_v28  ;;  %v179_v16 = vld [vmem:[#allocation16 + $0x190] sm:$0xff]  ;;  %v4629_v28 = vpack.c.bf16 %v182_v25, %v181_v22  ;;  %v1654_v22 = vld [vmem:[#allocation13 + $0x60] sm:$0xff] }
 0x453   :  { %v975_v50 = vmul.f32 %v928_v17, %v4337_v38  ;;  %3464 = vmatprep.subr.bf16.mxu1 %v4529_v33 }
 0x454   :  { %3466 = vmatpush3.bf16.msra.mxu1 %v4529_v33 }
 0x455   :  { %v4535_v36 = vpack.c.bf16 %v976_v32, %v975_v50  ;;  %v2861_v13 = vpop.f32.mrb[12].mxu1  ;;  %v180_v32 = vld [vmem:[#allocation16 + $0x1b0] sm:$0xff] }
 0x456   :  { %v978_v35 = vmul.f32 %v2861_v13, %v4349_v42  ;;  %v938_v56 = vpop.f32.mrb[13].mxu1  ;;  %v4588_v17 = vpack.c.bf16 %v180_v32, %v179_v16  ;;  %v185_v13 = vld [vmem:[#allocation16 + $0x58] sm:$0xff] }
 0x457   :  { %v977_v53 = vmul.f32 %v938_v56, %v4347_v41  ;;  %3468 = vmatprep.subr.bf16.mxu1 %v4535_v36 }
 0x458   :  { %3470 = vmatpush3.bf16.msra.mxu1 %v4535_v36 }
 0x459   :  { %v4541_v39 = vpack.c.bf16 %v978_v35, %v977_v53  ;;  %v2864_v61 = vpop.f32.mrb[14].mxu1  ;;  %v186_v35 = vld [vmem:[#allocation16 + $0x78] sm:$0xff] }
 0x45a   :  { %v980_v38 = vmul.f32 %v2864_v61, %v4359_v45  ;;  %v948_v62 = vpop.f32.mrb[15].mxu1 }
 0x45b   :  { %v979_v63 = vmul.f32 %v948_v62, %v4357_v44  ;;  %3472 = vmatprep.subr.bf16.mxu1 %v4541_v39  ;;  %v165_v44 = vld [vmem:[#allocation16 + $0x1c8] sm:$0xff]  ;;  %v187_v62 = vld [vmem:[#allocation16 + $0x98] sm:$0xff] }
 0x45c   :  { %3474 = vmatpush3.bf16.msra.mxu1 %v4541_v39  ;;  %v4558_v54 = vpack.c.bf16 %v166_v0, %v165_v44  ;;  %v191_v44 = vld [vmem:[#allocation16 + $0x118] sm:$0xff] }
 0x45d   :  { %v4547_v42 = vpack.c.bf16 %v980_v38, %v979_v63  ;;  %v2867_v14 = vpop.f32.mrb[16].mxu1  ;;  %v4597_v38 = vpack.c.bf16 %v186_v35, %v185_v13  ;;  %v188_v63 = vld [vmem:[#allocation16 + $0xb8] sm:$0xff] }
 0x45e   :  { %v982_v41 = vmul.f32 %v2867_v14, %v4372_v48  ;;  %v958_v59 = vpop.f32.mrb[17].mxu1  ;;  %3512 = vmatprep.subr.bf16.mxu0 %v4558_v54  ;;  %v184_v48 = vld [vmem:[#allocation16 + $0x38] sm:$0xff]  ;;  %v4603_v14 = vpack.c.bf16 %v188_v63, %v187_v62 }
 0x45f   :  { %v981_v1 = vmul.f32 %v958_v59, %v4370_v47  ;;  %3476 = vmatprep.subr.bf16.mxu1 %v4547_v42  ;;  %3514 = vmatpush3.bf16.msra.mxu0 %v4558_v54  ;;  %v183_v47 = vld [vmem:[#allocation16 + $0x18] sm:$0xff] }
 0x460   :  { %3478 = vmatpush3.bf16.msra.mxu1 %v4547_v42  ;;  %v4562_v23 = vpack.c.bf16 %v184_v48, %v183_v47  ;;  %v190_v59 = vld [vmem:[#allocation16 + $0xf8] sm:$0xff] }
 0x461   :  { %v4553_v45 = vpack.c.bf16 %v982_v41, %v981_v1  ;;  %v189_v41 = vld [vmem:[#allocation16 + $0xd8] sm:$0xff] }
 0x462   :  { %3548 = vmatprep.subr.bf16.mxu0 %v4562_v23  ;;  %v4607_v1 = vpack.c.bf16 %v190_v59, %v189_v41  ;;  %v192_v0 = vld [vmem:[#allocation16 + $0x138] sm:$0xff] }
 0x463   :  { %3480 = vmatprep.subr.bf16.mxu1 %v4553_v45  ;;  %v4611_v47 = vpack.c.bf16 %v192_v0, %v191_v44  ;;  %v193_v48 = vld [vmem:[#allocation16 + $0x158] sm:$0xff] }
 0x464   :  { %3482 = vmatpush3.bf16.msra.mxu1 %v4553_v45  ;;  %v4615_v8 = vpack.c.bf16 %v194_v2, %v193_v48 }
 0x465   :  { %3516 = vmatprep.subr.bf16.mxu1 %v4565_v3 }
 0x467   :  { %2901 = vmatmul.mubr.f32.vlgmr.msra.gmra.mrb[18].mxu1 %v4380_v52  ;;  %v170_v52 = vld [vmem:[#allocation16 + $0x70] sm:$0xff] }
 0x468   :  { %v4567_v10 = vpack.c.bf16 %v170_v52, %v169_v24  ;;  %3518 = vmatpush3.bf16.msra.mxu1 %v4565_v3  ;;  %v195_v24 = vld [vmem:[#allocation16 + $0x198] sm:$0xff] }
 0x469   :  { %v196_v52 = vld [vmem:[#allocation16 + $0x1b8] sm:$0xff] }
 0x46a   :  { %3520 = vmatprep.subr.bf16.mxu1 %v4567_v10  ;;  %v4619_v9 = vpack.c.bf16 %v196_v52, %v195_v24 }
 0x46c   :  { %3522 = vmatpush3.bf16.msra.mxu1 %v4567_v10 }
 0x46d   :  { %3524 = vmatprep.subr.bf16.mxu1 %v4572_v5 }
 0x470   :  { %3526 = vmatpush3.bf16.msra.mxu1 %v4572_v5 }
 0x471   :  { %3528 = vmatprep.subr.bf16.mxu1 %v4576_v26 }
 0x474   :  { %3530 = vmatpush3.bf16.msra.mxu1 %v4576_v26 }
 0x475   :  { %3532 = vmatprep.subr.bf16.mxu1 %v4580_v7 }
 0x478   :  { %3534 = vmatpush3.bf16.msra.mxu1 %v4580_v7 }
 0x479   :  { %3536 = vmatprep.subr.bf16.mxu1 %v4584_v12 }
 0x47c   :  { %3538 = vmatpush3.bf16.msra.mxu1 %v4584_v12 }
 0x47d   :  { %3540 = vmatprep.subr.bf16.mxu1 %v4588_v17 }
 0x480   :  { %3542 = vmatpush3.bf16.msra.mxu1 %v4588_v17 }
 0x481   :  { %3544 = vmatprep.subr.bf16.mxu1 %v4629_v28 }
 0x484   :  { %3546 = vmatpush3.bf16.msra.mxu1 %v4629_v28 }
 0x485   :  { %3580 = vmatprep.subr.bf16.mxu1 %v4306_v27 }
 0x53a   :  { %v2902_v50 = vpop.f32.mrb[18].mxu1 }
 0x53b   :  { %v1065_v56 = vpop.f32.mrb[19].mxu1  ;;  %v4595_v61 = vmul.f32 0.35355338, %v2902_v50 }
 0x53c   :  { %v4593_v53 = vmul.f32 0.35355338, %v1065_v56 }
 0x53e   :  { %2935 = vmatprep.mubr.f32.mxu0 %v4593_v53 }
 0x53f   :  { %2936 = vmatmul.mubr.f32.vlgmr.msra.gmra.mrb[4].mxu0 %v4595_v61 }
 0x540   :  { %3550 = vmatpush3.bf16.msra.mxu0 %v4562_v23 }
 0x541   :  { %3552 = vmatprep.subr.bf16.mxu0 %v4597_v38 }
 0x544   :  { %3554 = vmatpush3.bf16.msra.mxu0 %v4597_v38 }
 0x545   :  { %3556 = vmatprep.subr.bf16.mxu0 %v4603_v14 }
 0x548   :  { %3558 = vmatpush3.bf16.msra.mxu0 %v4603_v14 }
 0x549   :  { %3560 = vmatprep.subr.bf16.mxu0 %v4607_v1 }
 0x54c   :  { %3562 = vmatpush3.bf16.msra.mxu0 %v4607_v1 }
 0x54d   :  { %3564 = vmatprep.subr.bf16.mxu0 %v4611_v47 }
 0x550   :  { %3566 = vmatpush3.bf16.msra.mxu0 %v4611_v47 }
 0x551   :  { %3568 = vmatprep.subr.bf16.mxu0 %v4615_v8 }
 0x554   :  { %3570 = vmatpush3.bf16.msra.mxu0 %v4615_v8 }
 0x555   :  { %3572 = vmatprep.subr.bf16.mxu0 %v4619_v9 }
 0x558   :  { %3574 = vmatpush3.bf16.msra.mxu0 %v4619_v9 }
 0x559   :  { %3576 = vmatprep.subr.bf16.mxu0 %v4623_v30 }
 0x55c   :  { %3578 = vmatpush3.bf16.msra.mxu0 %v4623_v30 }
 0x55d   :  { %3612 = vmatprep.subr.bf16.mxu0 %v4479_v18 }
 0x612   :  { %v2937_v57 = vpop.f32.mrb[4].mxu0 }
 0x613   :  { %v1142_v16 = vpop.f32.mrb[5].mxu0  ;;  %v1152_v50 = vmax.f32 %v4595_v61, %v2937_v57  ;;  %v1655_v57 = vld [vmem:[#allocation13 + $0x80] sm:$0xff] }
 0x614   :  { %v1151_v32 = vmax.f32 %v4593_v53, %v1142_v16  ;;  %v1656_v16 = vld [vmem:[#allocation13 + $0xa0] sm:$0xff] }
 0x616   :  { %2970 = vmatprep.mubr.f32.mxu1 %v1151_v32 }
 0x617   :  { %2971 = vmatmul.mubr.f32.vlgmr.msra.gmra.mrb[20].mxu1 %v1152_v50 }
 0x618   :  { %3582 = vmatpush3.bf16.msra.mxu1 %v4306_v27 }
 0x619   :  { %3584 = vmatprep.subr.bf16.mxu1 %v4315_v31 }
 0x61c   :  { %3586 = vmatpush3.bf16.msra.mxu1 %v4315_v31 }
 0x61d   :  { %3588 = vmatprep.subr.bf16.mxu1 %v4325_v34 }
 0x620   :  { %3590 = vmatpush3.bf16.msra.mxu1 %v4325_v34 }
 0x621   :  { %3592 = vmatprep.subr.bf16.mxu1 %v4335_v37 }
 0x624   :  { %3594 = vmatpush3.bf16.msra.mxu1 %v4335_v37 }
 0x625   :  { %3596 = vmatprep.subr.bf16.mxu1 %v4345_v40 }
 0x628   :  { %3598 = vmatpush3.bf16.msra.mxu1 %v4345_v40 }
 0x629   :  { %3600 = vmatprep.subr.bf16.mxu1 %v4355_v43 }
 0x62c   :  { %3602 = vmatpush3.bf16.msra.mxu1 %v4355_v43 }
 0x62d   :  { %3604 = vmatprep.subr.bf16.mxu1 %v4365_v46 }
 0x630   :  { %3606 = vmatpush3.bf16.msra.mxu1 %v4365_v46 }
 0x631   :  { %3608 = vmatprep.subr.bf16.mxu1 %v4376_v49 }
 0x634   :  { %3610 = vmatpush3.bf16.msra.mxu1 %v4376_v49 }
 0x635   :  { %3648 = vmatprep.subr.bf16.mxu1 %v4511_v21 }
 0x6ea   :  { %v2972_v13 = vpop.f32.mrb[20].mxu1 }
 0x6eb   :  { %v1219_v35 = vpop.f32.mrb[21].mxu1  ;;  %v1229_v62 = vmax.f32 %v1152_v50, %v2972_v13  ;;  %v1657_v13 = vld [vmem:[#allocation13 + $0xc0] sm:$0xff] }
 0x6ec   :  { %v1228_v56 = vmax.f32 %v1151_v32, %v1219_v35  ;;  %v3623_v32 = vpack.c.bf16 %v1656_v16, %v1655_v57  ;;  %v1658_v35 = vld [vmem:[#allocation13 + $0xe0] sm:$0xff]  ;;  %v1650_v16 = vld [vmem:[#allocation7 + $0x8] sm:$0xff] }
 0x6ee   :  { %3005 = vmatprep.mubr.f32.mxu0 %v1228_v56 }
 0x6ef   :  { %3006 = vmatmul.mubr.f32.vlgmr.msra.gmra.mrb[6].mxu0 %v1229_v62 }
 0x6f0   :  { %3614 = vmatpush3.bf16.msra.mxu0 %v4479_v18 }
 0x7c2   :  { %v3007_v63 = vpop.f32.mrb[6].mxu0 }
 0x7c3   :  { %v1306_v41 = vmax.f32 %v1229_v62, %v3007_v63  ;;  %v1296_v59 = vpop.f32.mrb[7].mxu0  ;;  %v1659_v63 = vld [vmem:[#allocation13 + $0x100] sm:$0xff] }
 0x7c4   :  { %v1305_v44 = vmax.f32 %v1228_v56, %v1296_v59  ;;  %v3627_v56 = vpack.c.bf16 %v1658_v35, %v1657_v13 }
 0x7c5   :  { %v1308_v0 = vsub.f32 %v4595_v61, %v1306_v41  ;;  %v1660_v41 = vld [vmem:[#allocation13 + $0x120] sm:$0xff] }
 0x7c6   :  { %v1307_v48 = vsub.f32 %v4593_v53, %v1305_v44  ;;  %v1652_v53 = vld [vmem:[#allocation13 + $0x20] sm:$0xff]  ;;  %v3631_v59 = vpack.c.bf16 %v1660_v41, %v1659_v63 }
 0x7c7   :  { %v1311_v2 = vmul.f32 1.442695, %v1308_v0  ;;  %v1661_v0 = vld [vmem:[#allocation13 + $0x140] sm:$0xff] }
 0x7c8   :  { %v1309_v24 = vmul.f32 1.442695, %v1307_v48  ;;  %v1662_v48 = vld [vmem:[#allocation13 + $0x160] sm:$0xff] }
 0x7ca   :  { %3885 = vpow2.f32 %v1309_v24 }
 0x7cb   :  { %3887 = vpow2.f32 %v1311_v2  ;;  %v3635_v2 = vpack.c.bf16 %v1662_v48, %v1661_v0  ;;  %v3906_v0 = vld [vmem:[#allocation16 + $0x80] sm:$0xff] }
 0x7d4   :  { %v3886_v52 = vpop.eup %3885 }
 0x7d5   :  { %v3888_v11 = vpop.eup %3887  ;;  %3040 = vmatprep.mubr.f32.mxu1 %v3886_v52 }
 0x7d6   :  { %3041 = vmatmul.mubr.f32.vlgmr.msra.gmra.mrb[22].mxu1 %v3888_v11 }
 0x7d7   :  { %3650 = vmatpush3.bf16.msra.mxu1 %v4511_v21 }
 0x7d8   :  { %3652 = vmatprep.subr.bf16.mxu1 %v4517_v15 }
 0x7db   :  { %3654 = vmatpush3.bf16.msra.mxu1 %v4517_v15 }
 0x7dc   :  { %3656 = vmatprep.subr.bf16.mxu1 %v4523_v29 }
 0x7df   :  { %3658 = vmatpush3.bf16.msra.mxu1 %v4523_v29 }
 0x7e0   :  { %3660 = vmatprep.subr.bf16.mxu1 %v4529_v33 }
 0x7e3   :  { %3662 = vmatpush3.bf16.msra.mxu1 %v4529_v33 }
 0x7e4   :  { %3664 = vmatprep.subr.bf16.mxu1 %v4535_v36 }
 0x7e7   :  { %3666 = vmatpush3.bf16.msra.mxu1 %v4535_v36 }
 0x7e8   :  { %3668 = vmatprep.subr.bf16.mxu1 %v4541_v39 }
 0x7eb   :  { %3670 = vmatpush3.bf16.msra.mxu1 %v4541_v39  ;;  %v1651_v39 = vld [vmem:[#allocation13] sm:$0xff] }
 0x7ec   :  { %3672 = vmatprep.subr.bf16.mxu1 %v4547_v42  ;;  %v3615_v61 = vpack.c.bf16 %v1652_v53, %v1651_v39 }
 0x7ee   :  { %3616 = vmatprep.subr.bf16.mxu0 %v3615_v61 }
 0x7ef   :  { %3674 = vmatpush3.bf16.msra.mxu1 %v4547_v42 }
 0x7f0   :  { %3676 = vmatprep.subr.bf16.mxu1 %v4553_v45 }
 0x7f3   :  { %3678 = vmatpush3.bf16.msra.mxu1 %v4553_v45  ;;  %v3619_v45 = vpack.c.bf16 %v1654_v22, %v1653_v6 }
 0x7f4   :  { %3712 = vmatprep.subr.bf16.mxu1 %v4565_v3 }
 0x8a9   :  { %v3042_v18 = vpop.f32.mrb[22].mxu1 }
 0x8aa   :  { %v1379_v21 = vpop.f32.mrb[23].mxu1 }
 0x8ab   :  { %3889 = vrcp.f32 %v1379_v21 }
 0x8ac   :  { %3891 = vrcp.f32 %v3042_v18 }
 0x8b5   :  { %v3890_v15 = vpop.eup %3889 }
 0x8b6   :  { %v1389_v29 = vmul.f32 %v3890_v15, %v3886_v52  ;;  %v3892_v33 = vpop.eup %3891  ;;  %v1663_v52 = vld [vmem:[#allocation13 + $0x180] sm:$0xff] }
 0x8b7   :  { %v1391_v36 = vmul.f32 %v3892_v33, %v3888_v11  ;;  %v1664_v11 = vld [vmem:[#allocation13 + $0x1a0] sm:$0xff] }
 0x8b8   :  { %1392 = vxpose.xlu1.b32.start [1/2] (short) %v1389_v29, 128  ;;  %v3639_v18 = vpack.c.bf16 %v1664_v11, %v1663_v52  ;;  %v1665_v15 = vld [vmem:[#allocation13 + $0x1c0] sm:$0xff] }
 0x8b9   :  { %v1666_v29 = vld [vmem:[#allocation13 + $0x1e0] sm:$0xff] }
 0x8ba   :  { %v3643_v33 = vpack.c.bf16 %v1666_v29, %v1665_v15  ;;  %v3907_v52 = vld [vmem:[#allocation16 + $0xe0] sm:$0xff] }
 0x8bc   :  { %1393 = vxpose.xlu1.b32.end [2/2] (short) %v1391_v36, 128 }
 0x938   :  { %v1408_v42 = vpop.trf.xlu1 }
 0x939   :  { %3047 = vmatprep.mubr.msk.f32.mxu0 %vm773_vm0, %v1408_v42 }
 0x93c   :  { %v1409_v25 = vpop.trf.xlu1 }
 0x93d   :  { %3048 = vmatmul.mubr.msk.f32.vlgmr.msra.gmra.mrb[8].mxu0 %vm773_vm0, %v1409_v25  ;;  %v1649_v25 = vld [vmem:[#allocation7] sm:$0xff] }
 0x93e   :  { %3618 = vmatpush3.bf16.msra.mxu0 %v3615_v61 }
 0x93f   :  { %3620 = vmatprep.subr.bf16.mxu0 %v3619_v45 }
 0x940   :  { %v1410_v50 = vpop.trf.xlu1 }
 0x941   :  { %3050 = vmatprep.mubr.msk.f32.mxu0 %vm773_vm0, %v1410_v50 }
 0x942   :  { %3622 = vmatpush3.bf16.msra.mxu0 %v3619_v45 }
 0x943   :  { %3624 = vmatprep.subr.bf16.mxu0 %v3623_v32 }
 0x944   :  { %v1411_v62 = vpop.trf.xlu1 }
 0x945   :  { %3051 = vmatmul.mubr.msk.f32.gmra.mrb[10].mxu0 %vm773_vm0, %v1411_v62  ;;  %v3904_v62 = vld [vmem:[#allocation16 + $0x40] sm:$0xff] }
 0x946   :  { %3626 = vmatpush3.bf16.msra.mxu0 %v3623_v32  ;;  %v3902_v32 = vld [vmem:[#allocation16] sm:$0xff] }
 0x947   :  { %3628 = vmatprep.subr.bf16.mxu0 %v3627_v56 }
 0x948   :  { %v1412_v44 = vpop.trf.xlu1 }
 0x949   :  { %3053 = vmatprep.mubr.msk.f32.mxu0 %vm773_vm0, %v1412_v44 }
 0x94a   :  { %3630 = vmatpush3.bf16.msra.mxu0 %v3627_v56 }
 0x94b   :  { %3632 = vmatprep.subr.bf16.mxu0 %v3631_v59 }
 0x94c   :  { %v1413_v24 = vpop.trf.xlu1 }
 0x94d   :  { %3054 = vmatmul.mubr.msk.f32.gmra.mrb[12].mxu0 %vm773_vm0, %v1413_v24 }
 0x94e   :  { %3634 = vmatpush3.bf16.msra.mxu0 %v3631_v59 }
 0x94f   :  { %3636 = vmatprep.subr.bf16.mxu0 %v3635_v2 }
 0x950   :  { %v1414_v21 = vpop.trf.xlu1 }
 0x951   :  { %3056 = vmatprep.mubr.msk.f32.mxu0 %vm773_vm0, %v1414_v21  ;;  %v3908_v21 = vld [vmem:[#allocation16 + $0xc0] sm:$0xff] }
 0x952   :  { %3638 = vmatpush3.bf16.msra.mxu0 %v3635_v2 }
 0x953   :  { %3640 = vmatprep.subr.bf16.mxu0 %v3639_v18 }
 0x954   :  { %v1415_v36 = vpop.trf.xlu1 }
 0x955   :  { %3057 = vmatmul.mubr.msk.f32.gmra.mrb[14].mxu0 %vm773_vm0, %v1415_v36  ;;  %v3909_v36 = vld [vmem:[#allocation16 + $0x120] sm:$0xff] }
 0x956   :  { %3642 = vmatpush3.bf16.msra.mxu0 %v3639_v18 }
 0x957   :  { %3644 = vmatprep.subr.bf16.mxu0 %v3643_v33 }
 0x958   :  { %v1416_v39 = vpop.trf.xlu1 }
 0x959   :  { %3059 = vmatprep.mubr.msk.f32.mxu0 %vm773_vm0, %v1416_v39 }
 0x95a   :  { %3646 = vmatpush3.bf16.msra.mxu0 %v3643_v33 }
 0x95b   :  { %3680 = vmatprep.subr.bf16.mxu0 %v4481_v20 }
 0x95c   :  { %v1417_v53 = vpop.trf.xlu1 }
 0x95d   :  { %3060 = vmatmul.mubr.msk.f32.gmra.mrb[16].mxu0 %vm773_vm0, %v1417_v53 }
 0x960   :  { %v1418_v61 = vpop.trf.xlu1 }
 0x961   :  { %3062 = vmatprep.mubr.msk.f32.mxu0 %vm773_vm0, %v1418_v61  ;;  %v3910_v61 = vld [vmem:[#allocation16 + $0x100] sm:$0xff] }
 0x964   :  { %v1419_v42 = vpop.trf.xlu1 }
 0x965   :  { %3063 = vmatmul.mubr.msk.f32.gmra.mrb[18].mxu0 %vm773_vm0, %v1419_v42 }
 0x968   :  { %v1420_v6 = vpop.trf.xlu1 }
 0x969   :  { %3065 = vmatprep.mubr.msk.f32.mxu0 %vm773_vm0, %v1420_v6 }
 0x96c   :  { %v1421_v22 = vpop.trf.xlu1 }
 0x96d   :  { %3066 = vmatmul.mubr.msk.f32.gmra.mrb[20].mxu0 %vm773_vm0, %v1421_v22 }
 0x970   :  { %v1422_v45 = vpop.trf.xlu1 }
 0x971   :  { %3068 = vmatprep.mubr.msk.f32.mxu0 %vm773_vm0, %v1422_v45  ;;  %v3911_v45 = vld [vmem:[#allocation16 + $0x160] sm:$0xff] }
 0x974   :  { %v1423_v57 = vpop.trf.xlu1 }
 0x975   :  { %3069 = vmatmul.mubr.msk.f32.gmra.mrb[22].mxu0 %vm773_vm0, %v1423_v57 }
 0x976   :  { %3103 = vmatprep.mubr.f32.mxu0 %v1649_v25 }
 0x979   :  { %3104 = vmatmul.mubr.f32.vlgmr.msra.gmra.mrb[24].mxu0 %v1650_v16  ;;  %v3912_v16 = vld [vmem:[#allocation16 + $0x140] sm:$0xff] }
 0x97a   :  { %3682 = vmatpush3.bf16.msra.mxu0 %v4481_v20 }
 0x97b   :  { %3684 = vmatprep.subr.bf16.mxu0 %v4483_v19 }
 0x97e   :  { %3686 = vmatpush3.bf16.msra.mxu0 %v4483_v19  ;;  %v3901_v19 = vld [vmem:[#allocation16 + $0x20] sm:$0xff] }
 0x97f   :  { %3688 = vmatprep.subr.bf16.mxu0 %v4488_v55 }
 0x982   :  { %3690 = vmatpush3.bf16.msra.mxu0 %v4488_v55 }
 0x983   :  { %3692 = vmatprep.subr.bf16.mxu0 %v4492_v51 }
 0x986   :  { %3694 = vmatpush3.bf16.msra.mxu0 %v4492_v51 }
 0x987   :  { %3696 = vmatprep.subr.bf16.mxu0 %v4496_v58 }
 0x98a   :  { %3698 = vmatpush3.bf16.msra.mxu0 %v4496_v58 }
 0x98b   :  { %3700 = vmatprep.subr.bf16.mxu0 %v4500_v60 }
 0x98e   :  { %3702 = vmatpush3.bf16.msra.mxu0 %v4500_v60  ;;  %v3903_v60 = vld [vmem:[#allocation16 + $0x60] sm:$0xff] }
 0x98f   :  { %3704 = vmatprep.subr.bf16.mxu0 %v4504_v4 }
 0x992   :  { %3706 = vmatpush3.bf16.msra.mxu0 %v4504_v4 }
 0x993   :  { %3708 = vmatprep.subr.bf16.mxu0 %v4558_v54 }
 0x996   :  { %3710 = vmatpush3.bf16.msra.mxu0 %v4558_v54  ;;  %v3905_v54 = vld [vmem:[#allocation16 + $0xa0] sm:$0xff] }
 0x997   :  { %3744 = vmatprep.subr.bf16.mxu0 %v4562_v23 }
 0xa10   :  { %v3049_v20 = vpop.f32.mrb[8].mxu0 }
 0xa11   :  { %v1618_v55 = vmul.f32 %v3901_v19, %v3049_v20  ;;  %v1538_v51 = vpop.f32.mrb[9].mxu0 }
 0xa12   :  { %v1617_v58 = vmul.f32 %v3902_v32, %v1538_v51  ;;  %v3913_v51 = vld [vmem:[#allocation16 + $0x1a0] sm:$0xff] }
 0xa14   :  { %v4704_v50 = vpack.c.bf16 %v1618_v55, %v1617_v58 }
 0xa18   :  { %v3052_v13 = vpop.f32.mrb[10].mxu0 }
 0xa19   :  { %v1620_v35 = vmul.f32 %v3903_v60, %v3052_v13  ;;  %v1548_v56 = vpop.f32.mrb[11].mxu0  ;;  %v3914_v13 = vld [vmem:[#allocation16 + $0x180] sm:$0xff] }
 0xa1a   :  { %v1619_v4 = vmul.f32 %v3904_v62, %v1548_v56  ;;  %v3915_v62 = vld [vmem:[#allocation16 + $0x1e0] sm:$0xff] }
 0xa1c   :  { %v4706_v63 = vpack.c.bf16 %v1620_v35, %v1619_v4 }
 0xa20   :  { %v3055_v41 = vpop.f32.mrb[12].mxu0 }
 0xa21   :  { %v1622_v59 = vmul.f32 %v3905_v54, %v3055_v41  ;;  %v1558_v44 = vpop.f32.mrb[13].mxu0  ;;  %v3916_v54 = vld [vmem:[#allocation16 + $0x1c0] sm:$0xff] }
 0xa22   :  { %v1621_v48 = vmul.f32 %v3906_v0, %v1558_v44  ;;  %v2409_v44 = vld [vmem:[#allocation15] ss:$0 sm:$0xff] }
 0xa24   :  { %v4708_v2 = vpack.c.bf16 %v1622_v59, %v1621_v48 }
 0xa28   :  { %v3058_v24 = vpop.f32.mrb[14].mxu0 }
 0xa29   :  { %v1624_v11 = vmul.f32 %v3907_v52, %v3058_v24  ;;  %v1568_v18 = vpop.f32.mrb[15].mxu0 }
 0xa2a   :  { %v1623_v15 = vmul.f32 %v3908_v21, %v1568_v18  ;;  %v2253_v21 = vld [vmem:[#allocation13 + $0x98] sm:$0xff] }
 0xa2c   :  { %v4710_v29 = vpack.c.bf16 %v1624_v11, %v1623_v15  ;;  %v2254_v15 = vld [vmem:[#allocation13 + $0xb8] sm:$0xff] }
 0xa30   :  { %v3061_v33 = vpop.f32.mrb[16].mxu0 }
 0xa31   :  { %v1626_v39 = vmul.f32 %v3909_v36, %v3061_v33  ;;  %v1578_v53 = vpop.f32.mrb[17].mxu0  ;;  %v2255_v33 = vld [vmem:[#allocation13 + $0xd8] sm:$0xff] }
 0xa32   :  { %v1625_v42 = vmul.f32 %v3910_v61, %v1578_v53  ;;  %v2256_v36 = vld [vmem:[#allocation13 + $0xf8] sm:$0xff] }
 0xa33   :  { %v2257_v53 = vld [vmem:[#allocation13 + $0x118] sm:$0xff] }
 0xa34   :  { %v4712_v6 = vpack.c.bf16 %v1626_v39, %v1625_v42  ;;  %v3851_v39 = vpack.c.bf16 %v2256_v36, %v2255_v33  ;;  %v2258_v61 = vld [vmem:[#allocation13 + $0x138] sm:$0xff] }
 0xa35   :  { %v3855_v42 = vpack.c.bf16 %v2258_v61, %v2257_v53 }
 0xa38   :  { %v3064_v22 = vpop.f32.mrb[18].mxu0 }
 0xa39   :  { %v1628_v25 = vmul.f32 %v3911_v45, %v3064_v22  ;;  %v1588_v57 = vpop.f32.mrb[19].mxu0  ;;  %v2260_v22 = vld [vmem:[#allocation13 + $0x178] sm:$0xff] }
 0xa3a   :  { %v1627_v20 = vmul.f32 %v3912_v16, %v1588_v57  ;;  %v2262_v57 = vld [vmem:[#allocation13 + $0x1b8] sm:$0xff] }
 0xa3c   :  { %v4714_v19 = vpack.c.bf16 %v1628_v25, %v1627_v20  ;;  %v2261_v25 = vld [vmem:[#allocation13 + $0x198] sm:$0xff] }
 0xa3d   :  { %v3863_v16 = vpack.c.bf16 %v2262_v57, %v2261_v25  ;;  %v2263_v20 = vld [vmem:[#allocation13 + $0x1d8] sm:$0xff] }
 0xa40   :  { %v3067_v55 = vpop.f32.mrb[20].mxu0 }
 0xa41   :  { %v1630_v32 = vmul.f32 %v3913_v51, %v3067_v55  ;;  %v1598_v58 = vpop.f32.mrb[21].mxu0 }
 0xa42   :  { %v1629_v60 = vmul.f32 %v3914_v13, %v1598_v58 }
 0xa44   :  { %v4716_v35 = vpack.c.bf16 %v1630_v32, %v1629_v60 }
 0xa48   :  { %v3070_v56 = vpop.f32.mrb[22].mxu0 }
 0xa49   :  { %v1632_v4 = vmul.f32 %v3915_v62, %v3070_v56  ;;  %v1608_v41 = vpop.f32.mrb[23].mxu0 }
 0xa4a   :  { %v1631_v59 = vmul.f32 %v3916_v54, %v1608_v41  ;;  %v2348_v54 = vld [vmem:[#allocation12 + $0x8] sm:$0xff] }
 0xa4c   :  { %v4718_v0 = vpack.c.bf16 %v1632_v4, %v1631_v59  ;;  %v3105_v48 = vpop.f32.mrb[24].mxu0  ;;  %v2410_v4 = vld [vmem:[#allocation15 + $0x3] ss:$0 sm:$0xff] }
 0xa4d   :  { %v1740_v24 = vpop.f32.mrb[25].mxu0  ;;  %v1746_v11 = vadd.f32 %v3105_v48, %v2409_v44 }
 0xa4e   :  { %v1741_v52 = vadd.f32 %v2409_v44, %v1740_v24 }
 0xa50   :  { %3138 = vmatprep.mubr.f32.mxu1 %v1741_v52 }
 0xa51   :  { %3139 = vmatmul.mubr.f32.vlgmr.msra.gmra.mrb[24].mxu1 %v1746_v11 }
 0xa52   :  { %3714 = vmatpush3.bf16.msra.mxu1 %v4565_v3 }
 0xa53   :  { %3716 = vmatprep.subr.bf16.mxu1 %v4567_v10 }
 0xa56   :  { %3718 = vmatpush3.bf16.msra.mxu1 %v4567_v10 }
 0xa57   :  { %3720 = vmatprep.subr.bf16.mxu1 %v4572_v5 }
 0xa5a   :  { %3722 = vmatpush3.bf16.msra.mxu1 %v4572_v5 }
 0xa5b   :  { %3724 = vmatprep.subr.bf16.mxu1 %v4576_v26 }
 0xa5e   :  { %3726 = vmatpush3.bf16.msra.mxu1 %v4576_v26 }
 0xa5f   :  { %3728 = vmatprep.subr.bf16.mxu1 %v4580_v7 }
 0xa62   :  { %3730 = vmatpush3.bf16.msra.mxu1 %v4580_v7 }
 0xa63   :  { %3732 = vmatprep.subr.bf16.mxu1 %v4584_v12 }
 0xa66   :  { %3734 = vmatpush3.bf16.msra.mxu1 %v4584_v12 }
 0xa67   :  { %3736 = vmatprep.subr.bf16.mxu1 %v4588_v17 }
 0xa6a   :  { %3738 = vmatpush3.bf16.msra.mxu1 %v4588_v17 }
 0xa6b   :  { %3740 = vmatprep.subr.bf16.mxu1 %v4629_v28 }
 0xa6e   :  { %3742 = vmatpush3.bf16.msra.mxu1 %v4629_v28  ;;  %v2250_v28 = vld [vmem:[#allocation13 + $0x38] sm:$0xff] }
 0xa6f   :  { %3776 = vmatprep.subr.bf16.mxu1 %v4306_v27 }
 0xb24   :  { %v3140_v3 = vpop.f32.mrb[24].mxu1 }
 0xb25   :  { %v1831_v10 = vpop.f32.mrb[25].mxu1  ;;  %v4738_v26 = vmul.f32 0.35355338, %v3140_v3 }
 0xb26   :  { %v4736_v5 = vmul.f32 0.35355338, %v1831_v10 }
 0xb28   :  { %3173 = vmatprep.mubr.f32.mxu0 %v4736_v5 }
 0xb29   :  { %3174 = vmatmul.mubr.f32.vlgmr.msra.gmra.mrb[26].mxu0 %v4738_v26 }
 0xb2a   :  { %3746 = vmatpush3.bf16.msra.mxu0 %v4562_v23 }
 0xb2b   :  { %3748 = vmatprep.subr.bf16.mxu0 %v4597_v38 }
 0xb2e   :  { %3750 = vmatpush3.bf16.msra.mxu0 %v4597_v38 }
 0xb2f   :  { %3752 = vmatprep.subr.bf16.mxu0 %v4603_v14 }
 0xb32   :  { %3754 = vmatpush3.bf16.msra.mxu0 %v4603_v14 }
 0xb33   :  { %3756 = vmatprep.subr.bf16.mxu0 %v4607_v1 }
 0xb36   :  { %3758 = vmatpush3.bf16.msra.mxu0 %v4607_v1 }
 0xb37   :  { %3760 = vmatprep.subr.bf16.mxu0 %v4611_v47 }
 0xb3a   :  { %3762 = vmatpush3.bf16.msra.mxu0 %v4611_v47 }
 0xb3b   :  { %3764 = vmatprep.subr.bf16.mxu0 %v4615_v8 }
 0xb3e   :  { %3766 = vmatpush3.bf16.msra.mxu0 %v4615_v8 }
 0xb3f   :  { %3768 = vmatprep.subr.bf16.mxu0 %v4619_v9 }
 0xb42   :  { %3770 = vmatpush3.bf16.msra.mxu0 %v4619_v9 }
 0xb43   :  { %3772 = vmatprep.subr.bf16.mxu0 %v4623_v30 }
 0xb46   :  { %3774 = vmatpush3.bf16.msra.mxu0 %v4623_v30  ;;  %v2249_v30 = vld [vmem:[#allocation13 + $0x18] sm:$0xff] }
 0xb47   :  { %3808 = vmatprep.subr.bf16.mxu0 %v4704_v50 }
 0xbfc   :  { %v3175_v23 = vpop.f32.mrb[26].mxu0 }
 0xbfd   :  { %v1908_v7 = vpop.f32.mrb[27].mxu0  ;;  %v1918_v17 = vmax.f32 %v4738_v26, %v3175_v23 }
 0xbfe   :  { %v1917_v12 = vmax.f32 %v4736_v5, %v1908_v7 }
 0xc00   :  { %3208 = vmatprep.mubr.f32.mxu1 %v1917_v12 }
 0xc01   :  { %3209 = vmatmul.mubr.f32.vlgmr.msra.gmra.mrb[26].mxu1 %v1918_v17 }
 0xc02   :  { %3778 = vmatpush3.bf16.msra.mxu1 %v4306_v27 }
 0xc03   :  { %3780 = vmatprep.subr.bf16.mxu1 %v4315_v31 }
 0xc06   :  { %3782 = vmatpush3.bf16.msra.mxu1 %v4315_v31 }
 0xc07   :  { %3784 = vmatprep.subr.bf16.mxu1 %v4325_v34 }
 0xc0a   :  { %3786 = vmatpush3.bf16.msra.mxu1 %v4325_v34 }
 0xc0b   :  { %3788 = vmatprep.subr.bf16.mxu1 %v4335_v37 }
 0xc0e   :  { %3790 = vmatpush3.bf16.msra.mxu1 %v4335_v37 }
 0xc0f   :  { %3792 = vmatprep.subr.bf16.mxu1 %v4345_v40 }
 0xc12   :  { %3794 = vmatpush3.bf16.msra.mxu1 %v4345_v40 }
 0xc13   :  { %3796 = vmatprep.subr.bf16.mxu1 %v4355_v43 }
 0xc16   :  { %3798 = vmatpush3.bf16.msra.mxu1 %v4355_v43 }
 0xc17   :  { %3800 = vmatprep.subr.bf16.mxu1 %v4365_v46 }
 0xc1a   :  { %3802 = vmatpush3.bf16.msra.mxu1 %v4365_v46 }
 0xc1b   :  { %3804 = vmatprep.subr.bf16.mxu1 %v4376_v49 }
 0xc1e   :  { %3806 = vmatpush3.bf16.msra.mxu1 %v4376_v49 }
 0xcd4   :  { %v3210_v27 = vpop.f32.mrb[26].mxu1 }
 0xcd5   :  { %v1985_v31 = vpop.f32.mrb[27].mxu1  ;;  %v1995_v37 = vmax.f32 %v1918_v17, %v3210_v27 }
 0xcd6   :  { %v1994_v34 = vmax.f32 %v1917_v12, %v1985_v31 }
 0xcd8   :  { %3243 = vmatprep.mubr.f32.mxu0 %v1994_v34 }
 0xcd9   :  { %3244 = vmatmul.mubr.f32.vlgmr.msra.gmra.mrb[28].mxu0 %v1995_v37 }
 0xcda   :  { %3810 = vmatpush3.bf16.msra.mxu0 %v4704_v50  ;;  %v2251_v50 = vld [vmem:[#allocation13 + $0x58] sm:$0xff] }
 0xcdb   :  { %3812 = vmatprep.subr.bf16.mxu0 %v4706_v63 }
 0xcde   :  { %3814 = vmatpush3.bf16.msra.mxu0 %v4706_v63  ;;  %v3839_v63 = vpack.c.bf16 %v2250_v28, %v2249_v30 }
 0xcdf   :  { %3816 = vmatprep.subr.bf16.mxu0 %v4708_v2 }
 0xce0   :  { %3840 = vmatprep.subr.bf16.mxu1 %v3839_v63 }
 0xce2   :  { %3818 = vmatpush3.bf16.msra.mxu0 %v4708_v2  ;;  %v2252_v2 = vld [vmem:[#allocation13 + $0x78] sm:$0xff] }
 0xce3   :  { %3820 = vmatprep.subr.bf16.mxu0 %v4710_v29  ;;  %v3843_v18 = vpack.c.bf16 %v2252_v2, %v2251_v50 }
 0xce6   :  { %3822 = vmatpush3.bf16.msra.mxu0 %v4710_v29  ;;  %v3847_v29 = vpack.c.bf16 %v2254_v15, %v2253_v21 }
 0xce7   :  { %3824 = vmatprep.subr.bf16.mxu0 %v4712_v6 }
 0xcea   :  { %3826 = vmatpush3.bf16.msra.mxu0 %v4712_v6  ;;  %v2259_v6 = vld [vmem:[#allocation13 + $0x158] sm:$0xff] }
 0xceb   :  { %3828 = vmatprep.subr.bf16.mxu0 %v4714_v19  ;;  %v3859_v45 = vpack.c.bf16 %v2260_v22, %v2259_v6 }
 0xcee   :  { %3830 = vmatpush3.bf16.msra.mxu0 %v4714_v19  ;;  %v2264_v19 = vld [vmem:[#allocation13 + $0x1f8] sm:$0xff] }
 0xcef   :  { %3832 = vmatprep.subr.bf16.mxu0 %v4716_v35  ;;  %v3867_v55 = vpack.c.bf16 %v2264_v19, %v2263_v20 }
 0xcf2   :  { %3834 = vmatpush3.bf16.msra.mxu0 %v4716_v35 }
 0xcf3   :  { %3836 = vmatprep.subr.bf16.mxu0 %v4718_v0 }
 0xcf6   :  { %3838 = vmatpush3.bf16.msra.mxu0 %v4718_v0  ;;  %v2347_v0 = vld [vmem:[#allocation12] sm:$0xff] }
 0xdac   :  { %v3245_v40 = vpop.f32.mrb[28].mxu0 }
 0xdad   :  { %v2072_v43 = vmax.f32 %v1995_v37, %v3245_v40  ;;  %v2062_v46 = vpop.f32.mrb[29].mxu0 }
 0xdae   :  { %v2071_v49 = vmax.f32 %v1994_v34, %v2062_v46 }
 0xdaf   :  { %v2074_v38 = vsub.f32 %v4738_v26, %v2072_v43 }
 0xdb0   :  { %v2073_v14 = vsub.f32 %v4736_v5, %v2071_v49 }
 0xdb1   :  { %v2077_v1 = vmul.f32 1.442695, %v2074_v38 }
 0xdb2   :  { %v2075_v47 = vmul.f32 1.442695, %v2073_v14 }
 0xdb4   :  { %3893 = vpow2.f32 %v2075_v47 }
 0xdb5   :  { %3895 = vpow2.f32 %v2077_v1 }
 0xdbe   :  { %v3894_v8 = vpop.eup %3893 }
 0xdbf   :  { %v3896_v9 = vpop.eup %3895  ;;  %3278 = vmatprep.mubr.f32.mxu1 %v3894_v8 }
 0xdc0   :  { %3279 = vmatmul.mubr.f32.vlgmr.msra.gmra.mrb[28].mxu1 %v3896_v9 }
 0xdc1   :  { %3842 = vmatpush3.bf16.msra.mxu1 %v3839_v63 }
 0xdc2   :  { %3844 = vmatprep.subr.bf16.mxu1 %v3843_v18 }
 0xdc5   :  { %3846 = vmatpush3.bf16.msra.mxu1 %v3843_v18 }
 0xdc6   :  { %3848 = vmatprep.subr.bf16.mxu1 %v3847_v29 }
 0xdc9   :  { %3850 = vmatpush3.bf16.msra.mxu1 %v3847_v29 }
 0xdca   :  { %3852 = vmatprep.subr.bf16.mxu1 %v3851_v39 }
 0xdcd   :  { %3854 = vmatpush3.bf16.msra.mxu1 %v3851_v39 }
 0xdce   :  { %3856 = vmatprep.subr.bf16.mxu1 %v3855_v42 }
 0xdd1   :  { %3858 = vmatpush3.bf16.msra.mxu1 %v3855_v42 }
 0xdd2   :  { %3860 = vmatprep.subr.bf16.mxu1 %v3859_v45 }
 0xdd5   :  { %3862 = vmatpush3.bf16.msra.mxu1 %v3859_v45 }
 0xdd6   :  { %3864 = vmatprep.subr.bf16.mxu1 %v3863_v16 }
 0xdd9   :  { %3866 = vmatpush3.bf16.msra.mxu1 %v3863_v16 }
 0xdda   :  { %3868 = vmatprep.subr.bf16.mxu1 %v3867_v55 }
 0xddd   :  { %3870 = vmatpush3.bf16.msra.mxu1 %v3867_v55 }
 0xe93   :  { %v3280_v51 = vpop.f32.mrb[28].mxu1 }
 0xe94   :  { %3897 = vrcp.f32 %v3280_v51  ;;  %v2145_v32 = vpop.f32.mrb[29].mxu1 }
 0xe95   :  { %3899 = vrcp.f32 %v2145_v32 }
 0xe9e   :  { %v3898_v58 = vpop.eup %3897 }
 0xe9f   :  { %v3900_v13 = vpop.eup %3899  ;;  %v2157_v35 = vmul.f32 %v3898_v58, %v3896_v9 }
 0xea0   :  { %v2155_v60 = vmul.f32 %v3900_v13, %v3894_v8 }
 0xea2   :  { %3313 = vmatprep.mubr.f32.mxu0 %v2155_v60 }
 0xea3   :  { %3314 = vmatmul.mubr.f32.vlgmr.msra.gmra.mrb[30].mxu0 %v2157_v35 }
 0xf76   :  { %v3315_v56 = vpop.f32.mrb[30].mxu0 }
 0xf77   :  { %v2240_v62 = vpop.f32.mrb[31].mxu0 }
 0xf78   :  { %3348 = vmatprep.mubr.f32.mxu1 %v2240_v62 }
 0xf79   :  { %3349 = vmatmul.mubr.f32.vlgmr.msra.gmra.mrb[30].mxu1 %v3315_v56 }
0x104c   :  { %v3350_v41 = vpop.f32.mrb[30].mxu1 }
0x104d   :  { %v2344_v59 = vadd.f32 %v3350_v41, %v2410_v4  ;;  %v2338_v44 = vpop.f32.mrb[31].mxu1 }
0x104e   :  { %v2339_v48 = vadd.f32 %v2410_v4, %v2338_v44 }
0x104f   :  { %v2350_v24 = vadd.f32 %v2348_v54, %v2344_v59 }
0x1050   :  { %v2349_v52 = vadd.f32 %v2347_v0, %v2339_v48 }
0x1051   :  { %2352 = vst [vmem:[#allocation18 + $0x8] sm:$0xff] %v2350_v24 }
0x1052   :  { %2351 = vst [vmem:[#allocation18] sm:$0xff] %v2349_v52 }
0x1053   :  { %4104 = shalt.err (!%p4101_p12)
}
0x1054   :  { %s4105_s14 = scalar_lea.hbm %s4815_s8, 256 }
0x1055   :  { %p4106_p13 = scmp.ne.s32.totalorder %s4815_s8, %s4105_s14  ;;  %p4109_p0 = scmp.lt.u32.totalorder %s4105_s14, %s4815_s8 }
0x1057   :  { %p4111_p1 = pnand %p4109_p0, %p4106_p13 }
0x1059   :  { %4114 = shalt.err (!%p4111_p1)
}
0x105a   :  { %2364 = dma.vmem_to_hbm [thread:$0]  %s2359_s3, 256, %s4815_s8, [#allocation6], %s4128_s15, %s4128_s15, %s4129_s16  }
0x105b   :  { %4125 = dma.done.wait [#allocation6], 256  }
0x105c   :  { %4126 = vsyncadd [#allocation6], 4294967040 }
0x105d   :  { %2368 = vsyncpa [#allocation5], 1 }
0x105e   :  { %2369 = vsyncpa [#allocation8], 1 }
0x105f   :  { %2370 = vsyncpa [#allocation11], 1 }
0x1060   :  { %2371 = vsyncpa [#allocation14], 1 }
0x1061   :  { %2372 = vsyncpa [#allocation17], 1 }
0x1062   :  { %2373 = vsyncpa [#allocation6], 1 }

</bundles_post_ra>
